<compile_context>
chip_gen: v7x
topology: tpu7x:2x2x1
jax: 0.10.0
libtpu: 0.0.40
codegen_flags: <defaults>
</compile_context>

<pallas_src>
import functools

import numpy as np
import jax
import jax.numpy as jnp
from jax.experimental import pallas as pl
from jax.experimental.pallas import tpu as pltpu

EPS_BN = 1e-5     # nn.BatchNorm1d default eps
EPS_AGG = 1e-6    # GatedGCN aggregation eps


def _round_up(x, m):
    return (x + m - 1) // m * m


# ------------------ tiled matmul with fused bias / ReLU epilogue ------------

def _matmul_kernel(x_ref, w_ref, b_ref, o_ref, acc_ref, *, activation):
    @pl.when(pl.program_id(2) == 0)
    def _init():
        acc_ref[...] = jnp.zeros_like(acc_ref)

    acc_ref[...] += jnp.dot(x_ref[...], w_ref[...],
                            preferred_element_type=jnp.float32)

    @pl.when(pl.program_id(2) == pl.num_programs(2) - 1)
    def _finalize():
        y = acc_ref[...] + b_ref[...]
        if activation == "relu":
            y = jnp.maximum(y, 0.0)
        o_ref[...] = y.astype(o_ref.dtype)


def linear(x, w, b=None, activation=None):
    """y = x @ w + b (optional ReLU).  bf16 operands, f32 accumulation.

    M/N/K are padded to MXU/lane friendly tiles (M: mult of 8 up to 256,
    N/K: mult of 128 up to 512) and the grid is (M, N, K) tiles with a
    VMEM f32 accumulator and a fused epilogue on the last K step.
    """
    M, K = x.shape
    K2, N = w.shape
    assert K == K2
    if b is None:
        b = jnp.zeros((N,), jnp.float32)

    Mp = _round_up(M, 8)
    tm = min(256, Mp)
    Mp = _round_up(Mp, tm)
    Kp = _round_up(K, 128)
    tk = min(512, Kp)
    Kp = _round_up(Kp, tk)
    Np = _round_up(N, 128)
    tn = min(512, Np)
    Np = _round_up(Np, tn)

    xp = jnp.pad(x, ((0, Mp - M), (0, Kp - K))).astype(jnp.bfloat16)
    wp = jnp.pad(w, ((0, Kp - K), (0, Np - N))).astype(jnp.bfloat16)
    bp = jnp.pad(b.astype(jnp.float32).reshape(1, N), ((0, 0), (0, Np - N)))

    out = pl.pallas_call(
        functools.partial(_matmul_kernel, activation=activation),
        out_shape=jax.ShapeDtypeStruct((Mp, Np), jnp.float32),
        grid=(Mp // tm, Np // tn, Kp // tk),
        in_specs=[
            pl.BlockSpec((tm, tk), lambda i, j, k: (i, k)),
            pl.BlockSpec((tk, tn), lambda i, j, k: (k, j)),
            pl.BlockSpec((1, tn), lambda i, j, k: (0, j)),
        ],
        out_specs=pl.BlockSpec((tm, tn), lambda i, j, k: (i, j)),
        scratch_shapes=[pltpu.VMEM((tm, tn), jnp.float32)],
        compiler_params=pltpu.CompilerParams(
            dimension_semantics=("parallel", "parallel", "arbitrary")),
    )(xp, wp, bp)
    return out[:M, :N]


# ------------------ MEFG fused edge kernel (gather + conv-fold + BN + ReLU) --

def _mefg_edge_kernel(src_ref, dst_ref, hs_ref, hd_ref, emb_ref, lrg_ref,
                      ws_ref, wd_ref, cvec_ref, o_ref):
    hs = hs_ref[0]                                   # (1, Din) = h[src[i]]
    hd = hd_ref[0]                                   # (1, Din) = h[dst[i]]
    cvec = cvec_ref[...]                             # (5, H)
    lr_local = (jnp.dot(hs, ws_ref[...], preferred_element_type=jnp.float32)
                + jnp.dot(hd, wd_ref[...], preferred_element_type=jnp.float32)
                + cvec[0:1, :])                      # conv folded into weights
    x = emb_ref[0] + lrg_ref[0] + lr_local
    gamma, beta = cvec[1:2, :], cvec[2:3, :]
    mean, var = cvec[3:4, :], cvec[4:5, :]
    y = (x - mean) * jax.lax.rsqrt(var + EPS_BN) * gamma + beta
    o_ref[0] = jnp.maximum(y, 0.0)


def mefg_edge_combine(src_idx, dst_idx, h, embed_e, lr_global, Ws, Wd, cvec):
    N, Din = h.shape
    E, H = embed_e.shape
    h3 = h.reshape(N, 1, Din)
    grid_spec = pltpu.PrefetchScalarGridSpec(
        num_scalar_prefetch=2,
        grid=(E,),
        in_specs=[
            pl.BlockSpec((1, 1, Din), lambda i, s, d: (s[i], 0, 0)),  # h[src]
            pl.BlockSpec((1, 1, Din), lambda i, s, d: (d[i], 0, 0)),  # h[dst]
            pl.BlockSpec((1, 1, H), lambda i, s, d: (i, 0, 0)),       # embedding_e(e)
            pl.BlockSpec((1, 1, H), lambda i, s, d: (i, 0, 0)),       # lr_e_global
            pl.BlockSpec((Din, H), lambda i, s, d: (0, 0)),           # Ws
            pl.BlockSpec((Din, H), lambda i, s, d: (0, 0)),           # Wd
            pl.BlockSpec((5, H), lambda i, s, d: (0, 0)),             # [b_eff; BN]
        ],
        out_specs=pl.BlockSpec((1, 1, H), lambda i, s, d: (i, 0, 0)),
    )
    out = pl.pallas_call(
        _mefg_edge_kernel,
        out_shape=jax.ShapeDtypeStruct((E, 1, H), jnp.float32),
        grid_spec=grid_spec,
        compiler_params=pltpu.CompilerParams(dimension_semantics=("parallel",)),
    )(src_idx, dst_idx, h3, h3, embed_e.reshape(E, 1, H),
      lr_global.reshape(E, 1, H), Ws, Wd, cvec)
    return out.reshape(E, H)


# ------------------ GatedGCN fused edge kernel (gather + gate + segment-sum) -

def _gcn_edge_kernel(src_ref, dst_ref, hps_ref, hpd_ref, ce_ref, ein_ref, bn_ref,
                     eout_ref, num_ref, den_ref, *, residual):
    i = pl.program_id(0)

    @pl.when(i == 0)
    def _init():
        num_ref[...] = jnp.zeros_like(num_ref)
        den_ref[...] = jnp.zeros_like(den_ref)

    hps = hps_ref[0]                      # (4, H): rows A|B|D|E at src node
    hpd = hpd_ref[0]                      # (4, H): rows A|B|D|E at dst node
    bh_src = hps[1:2, :]
    dh_src = hps[2:3, :]
    eh_dst = hpd[3:4, :]

    e_hat = ce_ref[0] + dh_src + eh_dst   # (1, H)
    sigma = jax.nn.sigmoid(e_hat)
    msg = sigma * bh_src

    # segment-sum by destination node (VMEM-resident accumulators).
    d = dst_ref[i]
    num_ref[d] = num_ref[d] + msg
    den_ref[d] = den_ref[d] + sigma

    bn = bn_ref[...]                      # (4, H): gamma, beta, mean, var
    gamma, beta, mean, var = bn[0:1, :], bn[1:2, :], bn[2:3, :], bn[3:4, :]
    y = (e_hat - mean) * jax.lax.rsqrt(var + EPS_BN) * gamma + beta
    y = jnp.maximum(y, 0.0)
    if residual:
        y = ein_ref[0] + y
    eout_ref[0] = y


def gcn_gated_edge(src_idx, dst_idx, hp_r, ce, e_in, bn_e, residual=True):
    N, _, H = hp_r.shape
    E = ce.shape[0]
    grid_spec = pltpu.PrefetchScalarGridSpec(
        num_scalar_prefetch=2,
        grid=(E,),
        in_specs=[
            pl.BlockSpec((1, 4, H), lambda i, s, d: (s[i], 0, 0)),   # A|B|D|E @ src
            pl.BlockSpec((1, 4, H), lambda i, s, d: (d[i], 0, 0)),   # A|B|D|E @ dst
            pl.BlockSpec((1, 1, H), lambda i, s, d: (i, 0, 0)),      # Ce
            pl.BlockSpec((1, 1, H), lambda i, s, d: (i, 0, 0)),      # e_in (residual)
            pl.BlockSpec((4, H), lambda i, s, d: (0, 0)),            # packed BN
        ],
        out_specs=(
            pl.BlockSpec((1, 1, H), lambda i, s, d: (i, 0, 0)),      # e_out
            pl.BlockSpec((N, 1, H), lambda i, s, d: (0, 0, 0)),      # num accumulator
            pl.BlockSpec((N, 1, H), lambda i, s, d: (0, 0, 0)),      # den accumulator
        ),
    )
    e_out, num, den = pl.pallas_call(
        functools.partial(_gcn_edge_kernel, residual=residual),
        out_shape=(jax.ShapeDtypeStruct((E, 1, H), jnp.float32),
                   jax.ShapeDtypeStruct((N, 1, H), jnp.float32),
                   jax.ShapeDtypeStruct((N, 1, H), jnp.float32)),
        grid_spec=grid_spec,
        compiler_params=pltpu.CompilerParams(dimension_semantics=("arbitrary",)),
    )(src_idx, dst_idx, hp_r, hp_r, ce.reshape(E, 1, H), e_in.reshape(E, 1, H), bn_e)
    return e_out.reshape(E, H), num.reshape(N, H), den.reshape(N, H)


# ------------------ GatedGCN fused node kernel (agg + BN + ReLU + residual) --

def _gcn_node_kernel(ah_ref, num_ref, den_ref, hin_ref, bn_ref, o_ref, *, residual):
    h_hat = ah_ref[...] + num_ref[...] / (den_ref[...] + EPS_AGG)
    bn = bn_ref[...]
    gamma, beta, mean, var = bn[0:1, :], bn[1:2, :], bn[2:3, :], bn[3:4, :]
    y = (h_hat - mean) * jax.lax.rsqrt(var + EPS_BN) * gamma + beta
    y = jnp.maximum(y, 0.0)
    if residual:
        y = hin_ref[...] + y
    o_ref[...] = y


def gcn_node_update(ah, num, den, h_in, bn_h, residual=True):
    N, H = ah.shape
    Np = _round_up(N, 8)
    tr = min(512, Np)
    Np = _round_up(Np, tr)
    pad = Np - N

    def padrows(x):
        return jnp.pad(x, ((0, pad), (0, 0))) if pad else x

    ahp, nump, denp, hinp = map(padrows, (ah, num, den, h_in))
    row_spec = pl.BlockSpec((tr, H), lambda i: (i, 0))
    out = pl.pallas_call(
        functools.partial(_gcn_node_kernel, residual=residual),
        out_shape=jax.ShapeDtypeStruct((Np, H), jnp.float32),
        grid=(Np // tr,),
        in_specs=[row_spec, row_spec, row_spec, row_spec,
                  pl.BlockSpec((4, H), lambda i: (0, 0))],
        out_specs=row_spec,
        compiler_params=pltpu.CompilerParams(dimension_semantics=("parallel",)),
    )(ahp, nump, denp, hinp, bn_h)
    return out[:N]


# -------------------------- model forward (glue + kernels) ------------------

def _pack_bn(bn):
    return jnp.stack([bn["gamma"], bn["beta"], bn["mean"], bn["var"]], axis=0)


def mefg_forward(p, h, e, src_idx, dst_idx):
    H = p["proj3_w"].shape[1]

    # ---- global branch: transpose-free reassociation, no [in_dim, E] tensor ----
    A = linear(h.T, p["proj1_w"], p["proj1_b"], activation="relu")       # [Din, P]
    Bm = linear(A.T, p["proj3_w"])                                        # [P, H]
    w3sum = jnp.sum(p["proj3_w"], axis=0, keepdims=True)                  # [1, H]
    Baug = jnp.concatenate([Bm, w3sum], axis=0)                           # [P+1, H]
    W2aug = jnp.concatenate([p["proj2_w"].T, p["proj2_b"][:, None]], axis=1)  # [E, P+1]
    lr_global = linear(W2aug, Baug, p["proj3_b"])                         # [E, H]
    # F.dropout(h_e, training=False) -> identity

    # ---- embedding_e(e) ----
    embed_e = linear(e, p["embedding_e_w"], p["embedding_e_b"])           # [E, H]

    # ---- local branch: fold Conv1d(2,1,3,pad=1) into edge_proj2 (exact) ----
    W2e = p["edge_proj2_w"]                                               # [Din, H]
    cw, cb = p["conv_w"], p["conv_b"][0]
    up = jnp.concatenate([W2e[1:], jnp.zeros((1, H), W2e.dtype)], axis=0)     # W2e[j+1]
    down = jnp.concatenate([jnp.zeros((1, H), W2e.dtype), W2e[:-1]], axis=0)  # W2e[j-1]
    Ws = cw[0, 0] * up + cw[0, 1] * W2e + cw[0, 2] * down
    Wd = cw[1, 0] * up + cw[1, 1] * W2e + cw[1, 2] * down
    b_eff = cb * jnp.sum(W2e, axis=0) + p["edge_proj2_b"]

    bn = p["bn_lr_e"]
    cvec = jnp.stack([b_eff, bn["gamma"], bn["beta"], bn["mean"], bn["var"]], axis=0)

    return mefg_edge_combine(src_idx, dst_idx, h, embed_e, lr_global, Ws, Wd, cvec)


def gated_gcn_layer(lp, h, e, src_idx, dst_idx, residual=True):
    N = h.shape[0]
    Hout = lp["A_w"].shape[1]

    # one fused matmul for the four node projections A|B|D|E (wide MXU N-dim).
    W_abde = jnp.concatenate([lp["A_w"], lp["B_w"], lp["D_w"], lp["E_w"]], axis=1)
    b_abde = jnp.concatenate([lp["A_b"], lp["B_b"], lp["D_b"], lp["E_b"]])
    HP = linear(h, W_abde, b_abde)                         # [N, 4*Hout]
    Ce = linear(e, lp["C_w"], lp["C_b"])                   # [E, Hout]

    bn_e = _pack_bn(lp["bn_e"])
    bn_h = _pack_bn(lp["bn_h"])

    e_out, num, den = gcn_gated_edge(src_idx, dst_idx, HP.reshape(N, 4, Hout),
                                     Ce, e, bn_e, residual=residual)
    h_out = gcn_node_update(HP[:, :Hout], num, den, h, bn_h, residual=residual)
    return h_out, e_out


def gated_gcn_net_forward(params, h, e, src_idx, dst_idx, h_pos_enc=None):
    e = mefg_forward(params["mefg"], h, e, src_idx, dst_idx)
    h = linear(h, params["embedding_h_w"], params["embedding_h_b"])
    if h_pos_enc is not None:
        h = h + linear(h_pos_enc, params["embedding_pos_enc_w"],
                       params["embedding_pos_enc_b"])
    for lp in params["layers"]:
        h, e = gated_gcn_layer(lp, h, e, src_idx, dst_idx, residual=True)
    return h


# -------------------------- parameters --------------------------------------

def init_linear_params(key, in_dim, out_dim, scale=0.1):
    k1, k2 = jax.random.split(key)
    w = scale * jax.random.normal(k1, (in_dim, out_dim), jnp.float32)
    b = scale * jax.random.normal(k2, (out_dim,), jnp.float32)
    return w, b


def init_bn(dim):
    return {"gamma": jnp.ones((dim,), jnp.float32),
            "beta": jnp.zeros((dim,), jnp.float32),
            "mean": jnp.zeros((dim,), jnp.float32),
            "var": jnp.ones((dim,), jnp.float32)}


def init_params(key, n_nodes, n_edges, in_dim, in_dim_edge, hidden_dim, out_dim,
                n_layers, proj_hidden):
    keys = jax.random.split(key, 64)
    ki = iter(keys)

    mefg = {}
    # Original MEFG hardcodes proj1: Linear(235868, 512), proj2: Linear(512, 2358104)
    # i.e. (num_nodes -> 512 -> num_edges) for OGB-COLLAB; scaled to the toy graph.
    mefg["proj1_w"], mefg["proj1_b"] = init_linear_params(next(ki), n_nodes, proj_hidden)
    mefg["proj2_w"], mefg["proj2_b"] = init_linear_params(next(ki), proj_hidden, n_edges)
    mefg["proj3_w"], mefg["proj3_b"] = init_linear_params(next(ki), in_dim, hidden_dim)
    k1, k2 = jax.random.split(next(ki))
    mefg["conv_w"] = 0.1 * jax.random.normal(k1, (2, 3), jnp.float32)  # Conv1d(2,1,3).weight[0]
    mefg["conv_b"] = 0.1 * jax.random.normal(k2, (1,), jnp.float32)
    mefg["edge_proj2_w"], mefg["edge_proj2_b"] = init_linear_params(next(ki), in_dim, hidden_dim)
    mefg["embedding_e_w"], mefg["embedding_e_b"] = init_linear_params(next(ki), in_dim_edge, hidden_dim)
    mefg["bn_lr_e"] = init_bn(hidden_dim)

    params = {"mefg": mefg}
    params["embedding_h_w"], params["embedding_h_b"] = init_linear_params(next(ki), in_dim, hidden_dim)

    layers = []
    dims = [hidden_dim] * (n_layers - 1) + [out_dim]
    d_in = hidden_dim
    for d_out in dims:
        lp = {}
        for name in "ABCDE":
            lp[f"{name}_w"], lp[f"{name}_b"] = init_linear_params(next(ki), d_in, d_out)
        lp["bn_h"] = init_bn(d_out)
        lp["bn_e"] = init_bn(d_out)
        layers.append(lp)
        d_in = d_out
    params["layers"] = layers
    return params


# -------------------------- pure-JAX reference ------------------------------
# Structure-faithful reference (explicit conv, transposes, gather, segment_sum).
# Matmuls use the same precision policy as the kernels (bf16 operands, f32 acc).

def reference_forward(params, h, e, src_idx, dst_idx):
    def lin(x, w, b=None):
        y = jnp.dot(x.astype(jnp.bfloat16), w.astype(jnp.bfloat16),
                    preferred_element_type=jnp.float32)
        return y if b is None else y + b

    def bn(x, p):
        return (x - p["mean"]) * jax.lax.rsqrt(p["var"] + EPS_BN) * p["gamma"] + p["beta"]

    mp = params["mefg"]
    src_f, dst_f = h[src_idx], h[dst_idx]
    w, b = mp["conv_w"], mp["conv_b"]

    def sh_prev(x):
        return jnp.pad(x[:, :-1], ((0, 0), (1, 0)))

    def sh_next(x):
        return jnp.pad(x[:, 1:], ((0, 0), (0, 1)))

    conv = (w[0, 0] * sh_prev(src_f) + w[0, 1] * src_f + w[0, 2] * sh_next(src_f)
            + w[1, 0] * sh_prev(dst_f) + w[1, 1] * dst_f + w[1, 2] * sh_next(dst_f) + b[0])
    lr_local = lin(conv, mp["edge_proj2_w"], mp["edge_proj2_b"])
    h_e = jax.nn.relu(lin(h.T, mp["proj1_w"], mp["proj1_b"]))
    h_e = lin(h_e, mp["proj2_w"], mp["proj2_b"]).T
    lr_global = lin(h_e, mp["proj3_w"], mp["proj3_b"])
    embed_e = lin(e, mp["embedding_e_w"], mp["embedding_e_b"])
    e_cur = jax.nn.relu(bn(embed_e + lr_local + lr_global, mp["bn_lr_e"]))

    h_out = lin(h, params["embedding_h_w"], params["embedding_h_b"])
    N = h.shape[0]
    for lp in params["layers"]:
        Ah = lin(h_out, lp["A_w"], lp["A_b"]); Bh = lin(h_out, lp["B_w"], lp["B_b"])
        Dh = lin(h_out, lp["D_w"], lp["D_b"]); Eh = lin(h_out, lp["E_w"], lp["E_b"])
        Ce = lin(e_cur, lp["C_w"], lp["C_b"])
        e_hat = Ce + Dh[src_idx] + Eh[dst_idx]
        sigma = jax.nn.sigmoid(e_hat)
        num = jax.ops.segment_sum(sigma * Bh[src_idx], dst_idx, num_segments=N)
        den = jax.ops.segment_sum(sigma, dst_idx, num_segments=N)
        h_new = h_out + jax.nn.relu(bn(Ah + num / (den + EPS_AGG), lp["bn_h"]))
        e_new = e_cur + jax.nn.relu(bn(e_hat, lp["bn_e"]))
        h_out, e_cur = h_new, e_new
    return h_out


# -------------------------- main ---------------------------------------------

if __name__ == "__main__":
    N_NODES, N_EDGES = 32, 64
    IN_DIM, IN_DIM_EDGE, HIDDEN, OUT_DIM = 16, 16, 32, 32
    N_LAYERS = 2
    PROJ_HIDDEN = 64   # stands in for the hardcoded 512 in MEFG.proj1/proj2

    key = jax.random.PRNGKey(0)
    k_h, k_e, k_g, k_p = jax.random.split(key, 4)
    h = jax.random.normal(k_h, (N_NODES, IN_DIM), jnp.float32)
    e = jax.random.normal(k_e, (N_EDGES, IN_DIM_EDGE), jnp.float32)
    src_idx = jax.random.randint(k_g, (N_EDGES,), 0, N_NODES)
    dst_idx = (src_idx * 7 + jnp.arange(N_EDGES, dtype=jnp.int32)) % N_NODES

    params = init_params(k_p, N_NODES, N_EDGES, IN_DIM, IN_DIM_EDGE, HIDDEN, OUT_DIM,
                         N_LAYERS, PROJ_HIDDEN)

    fwd = jax.jit(gated_gcn_net_forward)
    h_out = jax.block_until_ready(fwd(params, h, e, src_idx, dst_idx))

    h_ref = jax.block_until_ready(reference_forward(params, h, e, src_idx, dst_idx))
    np.testing.assert_allclose(np.asarray(h_out), np.asarray(h_ref), rtol=2e-2, atol=2e-2)
    print("KERNEL_OK")
</pallas_src>

<mosaic_0001>
module attributes {stable_mosaic.version = 11 : i64} {
  func.func @_matmul_kernel(%arg0: i32, %arg1: i32, %arg2: i32, %arg3: memref<16x128xbf16, #tpu.memory_space<vmem>>, %arg4: memref<128x128xbf16, #tpu.memory_space<vmem>>, %arg5: memref<1x128xf32, #tpu.memory_space<vmem>>, %arg6: memref<16x128xf32, #tpu.memory_space<vmem>>, %arg7: memref<16x128xf32, #tpu.memory_space<vmem>>) attributes {dimension_semantics = [#tpu.dimension_semantics<parallel>, #tpu.dimension_semantics<parallel>, #tpu.dimension_semantics<arbitrary>], iteration_bounds = array<i64: 1, 1, 1>, scalar_prefetch = 0 : i64, scratch_operands = 1 : i64, tpu.core_type = #tpu.core_type<tc>, window_params = [{transform_indices = @transform_0, window_bounds = array<i64: 16, 128>}, {transform_indices = @transform_1, window_bounds = array<i64: 128, 128>}, {transform_indices = @transform_2, window_bounds = array<i64: 1, 128>}, {transform_indices = @transform_3, window_bounds = array<i64: 16, 128>}]} {
    %c0_i32 = arith.constant 0 : i32
    %0 = arith.cmpi eq, %arg2, %c0_i32 : i32
    %1 = arith.extui %0 : i1 to i32
    %c0_i32_0 = arith.constant 0 : i32
    %2 = arith.cmpi ne, %1, %c0_i32_0 : i32
    scf.if %2 {
      %cst_10 = arith.constant 0.000000e+00 : f32
      %12 = vector.broadcast %cst_10 : f32 to vector<16x128xf32>
      %c0_11 = arith.constant 0 : index
      %c0_12 = arith.constant 0 : index
      %13 = vector.load %arg7[%c0_11, %c0_12] : memref<16x128xf32, #tpu.memory_space<vmem>>, vector<16x128xf32>
      tpu.vector_store %arg7[%c0_11, %c0_12], %12 {strides = array<i32>} : memref<16x128xf32, #tpu.memory_space<vmem>>, vector<16x128xf32>,
    } else {
    }
    %c0 = arith.constant 0 : index
    %c0_1 = arith.constant 0 : index
    %3 = vector.load %arg7[%c0, %c0_1] : memref<16x128xf32, #tpu.memory_space<vmem>>, vector<16x128xf32>
    %c0_2 = arith.constant 0 : index
    %c0_3 = arith.constant 0 : index
    %4 = vector.load %arg3[%c0_2, %c0_3] : memref<16x128xbf16, #tpu.memory_space<vmem>>, vector<16x128xbf16>
    %c0_4 = arith.constant 0 : index
    %c0_5 = arith.constant 0 : index
    %5 = vector.load %arg4[%c0_4, %c0_5] : memref<128x128xbf16, #tpu.memory_space<vmem>>, vector<128x128xbf16>
    %cst = arith.constant dense<0.000000e+00> : vector<16x128xf32>
    %6 = tpu.matmul %4, %5, %cst {dimension_numbers = #tpu.dot_dimension_numbers<[1], [0], [0], [1], [0, 0, 1, 1], [], []>} : vector<16x128xbf16>, vector<128x128xbf16>, vector<16x128xf32> -> vector<16x128xf32>
    %7 = arith.addf %3, %6 : vector<16x128xf32>
    %c0_6 = arith.constant 0 : index
    %c0_7 = arith.constant 0 : index
    %8 = vector.load %arg7[%c0_6, %c0_7] : memref<16x128xf32, #tpu.memory_space<vmem>>, vector<16x128xf32>
    tpu.vector_store %arg7[%c0_6, %c0_7], %7 {strides = array<i32>} : memref<16x128xf32, #tpu.memory_space<vmem>>, vector<16x128xf32>,
    %c0_i32_8 = arith.constant 0 : i32
    %9 = arith.cmpi eq, %arg2, %c0_i32_8 : i32
    %10 = arith.extui %9 : i1 to i32
    %c0_i32_9 = arith.constant 0 : i32
    %11 = arith.cmpi ne, %10, %c0_i32_9 : i32
    scf.if %11 {
      %c0_10 = arith.constant 0 : index
      %c0_11 = arith.constant 0 : index
      %12 = vector.load %arg7[%c0_10, %c0_11] : memref<16x128xf32, #tpu.memory_space<vmem>>, vector<16x128xf32>
      %c0_12 = arith.constant 0 : index
      %c0_13 = arith.constant 0 : index
      %13 = vector.load %arg5[%c0_12, %c0_13] : memref<1x128xf32, #tpu.memory_space<vmem>>, vector<1x128xf32>
      %14 = vector.broadcast %13 : vector<1x128xf32> to vector<16x128xf32>
      %15 = arith.addf %12, %14 : vector<16x128xf32>
      %cst_14 = arith.constant 0.000000e+00 : f32
      %16 = vector.broadcast %cst_14 : f32 to vector<16x128xf32>
      %17 = arith.maximumf %15, %16 : vector<16x128xf32>
      %c0_15 = arith.constant 0 : index
      %c0_16 = arith.constant 0 : index
      %18 = vector.load %arg6[%c0_15, %c0_16] : memref<16x128xf32, #tpu.memory_space<vmem>>, vector<16x128xf32>
      tpu.vector_store %arg6[%c0_15, %c0_16], %17 {strides = array<i32>} : memref<16x128xf32, #tpu.memory_space<vmem>>, vector<16x128xf32>,
    } else {
    }
    return
  }
  func.func @transform_0(%arg0: i32, %arg1: i32, %arg2: i32) -> (i32, i32) {
    %c0_i32 = arith.constant 0 : i32
    return %arg0, %arg2 : i32, i32
  }
  func.func @transform_1(%arg0: i32, %arg1: i32, %arg2: i32) -> (i32, i32) {
    %c0_i32 = arith.constant 0 : i32
    return %arg2, %arg1 : i32, i32
  }
  func.func @transform_2(%arg0: i32, %arg1: i32, %arg2: i32) -> (i32, i32) {
    %c0_i32 = arith.constant 0 : i32
    %c0_i32_0 = arith.constant 0 : i32
    return %c0_i32, %arg1 : i32, i32
  }
  func.func @transform_3(%arg0: i32, %arg1: i32, %arg2: i32) -> (i32, i32) {
    %c0_i32 = arith.constant 0 : i32
    return %arg0, %arg1 : i32, i32
  }
}

module attributes {stable_mosaic.version = 11 : i64} {
  func.func @_matmul_kernel(%arg0: i32, %arg1: i32, %arg2: i32, %arg3: memref<64x128xbf16, #tpu.memory_space<vmem>>, %arg4: memref<128x128xbf16, #tpu.memory_space<vmem>>, %arg5: memref<1x128xf32, #tpu.memory_space<vmem>>, %arg6: memref<64x128xf32, #tpu.memory_space<vmem>>, %arg7: memref<64x128xf32, #tpu.memory_space<vmem>>) attributes {dimension_semantics = [#tpu.dimension_semantics<parallel>, #tpu.dimension_semantics<parallel>, #tpu.dimension_semantics<arbitrary>], iteration_bounds = array<i64: 1, 1, 1>, scalar_prefetch = 0 : i64, scratch_operands = 1 : i64, tpu.core_type = #tpu.core_type<tc>, window_params = [{transform_indices = @transform_0, window_bounds = array<i64: 64, 128>}, {transform_indices = @transform_1, window_bounds = array<i64: 128, 128>}, {transform_indices = @transform_2, window_bounds = array<i64: 1, 128>}, {transform_indices = @transform_3, window_bounds = array<i64: 64, 128>}]} {
    %c0_i32 = arith.constant 0 : i32
    %0 = arith.cmpi eq, %arg2, %c0_i32 : i32
    %1 = arith.extui %0 : i1 to i32
    %c0_i32_0 = arith.constant 0 : i32
    %2 = arith.cmpi ne, %1, %c0_i32_0 : i32
    scf.if %2 {
      %cst_10 = arith.constant 0.000000e+00 : f32
      %12 = vector.broadcast %cst_10 : f32 to vector<64x128xf32>
      %c0_11 = arith.constant 0 : index
      %c0_12 = arith.constant 0 : index
      %13 = vector.load %arg7[%c0_11, %c0_12] : memref<64x128xf32, #tpu.memory_space<vmem>>, vector<64x128xf32>
      tpu.vector_store %arg7[%c0_11, %c0_12], %12 {strides = array<i32>} : memref<64x128xf32, #tpu.memory_space<vmem>>, vector<64x128xf32>,
    } else {
    }
    %c0 = arith.constant 0 : index
    %c0_1 = arith.constant 0 : index
    %3 = vector.load %arg7[%c0, %c0_1] : memref<64x128xf32, #tpu.memory_space<vmem>>, vector<64x128xf32>
    %c0_2 = arith.constant 0 : index
    %c0_3 = arith.constant 0 : index
    %4 = vector.load %arg3[%c0_2, %c0_3] : memref<64x128xbf16, #tpu.memory_space<vmem>>, vector<64x128xbf16>
    %c0_4 = arith.constant 0 : index
    %c0_5 = arith.constant 0 : index
    %5 = vector.load %arg4[%c0_4, %c0_5] : memref<128x128xbf16, #tpu.memory_space<vmem>>, vector<128x128xbf16>
    %cst = arith.constant dense<0.000000e+00> : vector<64x128xf32>
    %6 = tpu.matmul %4, %5, %cst {dimension_numbers = #tpu.dot_dimension_numbers<[1], [0], [0], [1], [0, 0, 1, 1], [], []>} : vector<64x128xbf16>, vector<128x128xbf16>, vector<64x128xf32> -> vector<64x128xf32>
    %7 = arith.addf %3, %6 : vector<64x128xf32>
    %c0_6 = arith.constant 0 : index
    %c0_7 = arith.constant 0 : index
    %8 = vector.load %arg7[%c0_6, %c0_7] : memref<64x128xf32, #tpu.memory_space<vmem>>, vector<64x128xf32>
    tpu.vector_store %arg7[%c0_6, %c0_7], %7 {strides = array<i32>} : memref<64x128xf32, #tpu.memory_space<vmem>>, vector<64x128xf32>,
    %c0_i32_8 = arith.constant 0 : i32
    %9 = arith.cmpi eq, %arg2, %c0_i32_8 : i32
    %10 = arith.extui %9 : i1 to i32
    %c0_i32_9 = arith.constant 0 : i32
    %11 = arith.cmpi ne, %10, %c0_i32_9 : i32
    scf.if %11 {
      %c0_10 = arith.constant 0 : index
      %c0_11 = arith.constant 0 : index
      %12 = vector.load %arg7[%c0_10, %c0_11] : memref<64x128xf32, #tpu.memory_space<vmem>>, vector<64x128xf32>
      %c0_12 = arith.constant 0 : index
      %c0_13 = arith.constant 0 : index
      %13 = vector.load %arg5[%c0_12, %c0_13] : memref<1x128xf32, #tpu.memory_space<vmem>>, vector<1x128xf32>
      %14 = vector.broadcast %13 : vector<1x128xf32> to vector<64x128xf32>
      %15 = arith.addf %12, %14 : vector<64x128xf32>
      %c0_14 = arith.constant 0 : index
      %c0_15 = arith.constant 0 : index
      %16 = vector.load %arg6[%c0_14, %c0_15] : memref<64x128xf32, #tpu.memory_space<vmem>>, vector<64x128xf32>
      tpu.vector_store %arg6[%c0_14, %c0_15], %15 {strides = array<i32>} : memref<64x128xf32, #tpu.memory_space<vmem>>, vector<64x128xf32>,
    } else {
    }
    return
  }
  func.func @transform_0(%arg0: i32, %arg1: i32, %arg2: i32) -> (i32, i32) {
    %c0_i32 = arith.constant 0 : i32
    return %arg0, %arg2 : i32, i32
  }
  func.func @transform_1(%arg0: i32, %arg1: i32, %arg2: i32) -> (i32, i32) {
    %c0_i32 = arith.constant 0 : i32
    return %arg2, %arg1 : i32, i32
  }
  func.func @transform_2(%arg0: i32, %arg1: i32, %arg2: i32) -> (i32, i32) {
    %c0_i32 = arith.constant 0 : i32
    %c0_i32_0 = arith.constant 0 : i32
    return %c0_i32, %arg1 : i32, i32
  }
  func.func @transform_3(%arg0: i32, %arg1: i32, %arg2: i32) -> (i32, i32) {
    %c0_i32 = arith.constant 0 : i32
    return %arg0, %arg1 : i32, i32
  }
}

module attributes {stable_mosaic.version = 11 : i64} {
  func.func @_mefg_edge_kernel(%arg0: i32, %arg1: memref<64xi32, #tpu.memory_space<smem>>, %arg2: memref<64xi32, #tpu.memory_space<smem>>, %arg3: memref<1x1x16xf32, #tpu.memory_space<vmem>>, %arg4: memref<1x1x16xf32, #tpu.memory_space<vmem>>, %arg5: memref<1x1x32xf32, #tpu.memory_space<vmem>>, %arg6: memref<1x1x32xf32, #tpu.memory_space<vmem>>, %arg7: memref<16x32xf32, #tpu.memory_space<vmem>>, %arg8: memref<16x32xf32, #tpu.memory_space<vmem>>, %arg9: memref<5x32xf32, #tpu.memory_space<vmem>>, %arg10: memref<1x1x32xf32, #tpu.memory_space<vmem>>) attributes {dimension_semantics = [#tpu.dimension_semantics<parallel>], iteration_bounds = array<i64: 64>, scalar_prefetch = 2 : i64, scratch_operands = 0 : i64, tpu.core_type = #tpu.core_type<tc>, window_params = [{transform_indices = @transform_0, window_bounds = array<i64: 1, 1, 16>}, {transform_indices = @transform_1, window_bounds = array<i64: 1, 1, 16>}, {transform_indices = @transform_2, window_bounds = array<i64: 1, 1, 32>}, {transform_indices = @transform_3, window_bounds = array<i64: 1, 1, 32>}, {pipeline_mode = #tpu.pipeline_mode<synchronous>, transform_indices = @transform_4, window_bounds = array<i64: 16, 32>}, {pipeline_mode = #tpu.pipeline_mode<synchronous>, transform_indices = @transform_5, window_bounds = array<i64: 16, 32>}, {pipeline_mode = #tpu.pipeline_mode<synchronous>, transform_indices = @transform_6, window_bounds = array<i64: 5, 32>}, {transform_indices = @transform_7, window_bounds = array<i64: 1, 1, 32>}]} {
    %c0 = arith.constant 0 : index
    %c0_0 = arith.constant 0 : index
    %c0_1 = arith.constant 0 : index
    %0 = vector.load %arg3[%c0, %c0_0, %c0_1] : memref<1x1x16xf32, #tpu.memory_space<vmem>>, vector<1x1x16xf32>
    %1 = vector.shape_cast %0 : vector<1x1x16xf32> to vector<1x16xf32>
    %c0_2 = arith.constant 0 : index
    %c0_3 = arith.constant 0 : index
    %c0_4 = arith.constant 0 : index
    %2 = vector.load %arg4[%c0_2, %c0_3, %c0_4] : memref<1x1x16xf32, #tpu.memory_space<vmem>>, vector<1x1x16xf32>
    %3 = vector.shape_cast %2 : vector<1x1x16xf32> to vector<1x16xf32>
    %c0_5 = arith.constant 0 : index
    %c0_6 = arith.constant 0 : index
    %4 = vector.load %arg9[%c0_5, %c0_6] : memref<5x32xf32, #tpu.memory_space<vmem>>, vector<5x32xf32>
    %c0_7 = arith.constant 0 : index
    %c0_8 = arith.constant 0 : index
    %5 = vector.load %arg7[%c0_7, %c0_8] : memref<16x32xf32, #tpu.memory_space<vmem>>, vector<16x32xf32>
    %cst = arith.constant dense<0.000000e+00> : vector<1x32xf32>
    %6 = tpu.matmul %1, %5, %cst {dimension_numbers = #tpu.dot_dimension_numbers<[1], [0], [0], [1], [0, 0, 1, 1], [], []>} : vector<1x16xf32>, vector<16x32xf32>, vector<1x32xf32> -> vector<1x32xf32>
    %c0_9 = arith.constant 0 : index
    %c0_10 = arith.constant 0 : index
    %7 = vector.load %arg8[%c0_9, %c0_10] : memref<16x32xf32, #tpu.memory_space<vmem>>, vector<16x32xf32>
    %cst_11 = arith.constant dense<0.000000e+00> : vector<1x32xf32>
    %8 = tpu.matmul %3, %7, %cst_11 {dimension_numbers = #tpu.dot_dimension_numbers<[1], [0], [0], [1], [0, 0, 1, 1], [], []>} : vector<1x16xf32>, vector<16x32xf32>, vector<1x32xf32> -> vector<1x32xf32>
    %9 = arith.addf %6, %8 : vector<1x32xf32>
    %10 = vector.extract_strided_slice %4 {offsets = [0, 0], sizes = [1, 32], strides = [1, 1]} : vector<5x32xf32> to vector<1x32xf32>
    %11 = arith.addf %9, %10 : vector<1x32xf32>
    %c0_12 = arith.constant 0 : index
    %c0_13 = arith.constant 0 : index
    %c0_14 = arith.constant 0 : index
    %12 = vector.load %arg5[%c0_12, %c0_13, %c0_14] : memref<1x1x32xf32, #tpu.memory_space<vmem>>, vector<1x1x32xf32>
    %13 = vector.shape_cast %12 : vector<1x1x32xf32> to vector<1x32xf32>
    %c0_15 = arith.constant 0 : index
    %c0_16 = arith.constant 0 : index
    %c0_17 = arith.constant 0 : index
    %14 = vector.load %arg6[%c0_15, %c0_16, %c0_17] : memref<1x1x32xf32, #tpu.memory_space<vmem>>, vector<1x1x32xf32>
    %15 = vector.shape_cast %14 : vector<1x1x32xf32> to vector<1x32xf32>
    %16 = arith.addf %13, %15 : vector<1x32xf32>
    %17 = arith.addf %16, %11 : vector<1x32xf32>
    %18 = vector.extract_strided_slice %4 {offsets = [1, 0], sizes = [1, 32], strides = [1, 1]} : vector<5x32xf32> to vector<1x32xf32>
    %19 = vector.extract_strided_slice %4 {offsets = [2, 0], sizes = [1, 32], strides = [1, 1]} : vector<5x32xf32> to vector<1x32xf32>
    %20 = vector.extract_strided_slice %4 {offsets = [3, 0], sizes = [1, 32], strides = [1, 1]} : vector<5x32xf32> to vector<1x32xf32>
    %21 = vector.extract_strided_slice %4 {offsets = [4, 0], sizes = [1, 32], strides = [1, 1]} : vector<5x32xf32> to vector<1x32xf32>
    %22 = arith.subf %17, %20 : vector<1x32xf32>
    %cst_18 = arith.constant 9.99999974E-6 : f32
    %23 = vector.broadcast %cst_18 : f32 to vector<1x32xf32>
    %24 = arith.addf %21, %23 : vector<1x32xf32>
    %25 = math.rsqrt %24 : vector<1x32xf32>
    %26 = arith.mulf %22, %25 : vector<1x32xf32>
    %27 = arith.mulf %26, %18 : vector<1x32xf32>
    %28 = arith.addf %27, %19 : vector<1x32xf32>
    %cst_19 = arith.constant 0.000000e+00 : f32
    %29 = vector.broadcast %cst_19 : f32 to vector<1x32xf32>
    %30 = arith.maximumf %28, %29 : vector<1x32xf32>
    %c0_20 = arith.constant 0 : index
    %c0_21 = arith.constant 0 : index
    %c0_22 = arith.constant 0 : index
    %31 = vector.load %arg10[%c0_20, %c0_21, %c0_22] : memref<1x1x32xf32, #tpu.memory_space<vmem>>, vector<1x1x32xf32>
    %32 = vector.shape_cast %31 : vector<1x1x32xf32> to vector<1x32xf32>
    %33 = vector.shape_cast %30 : vector<1x32xf32> to vector<1x1x32xf32>
    tpu.vector_store %arg10[%c0_20, %c0_21, %c0_22], %33 {strides = array<i32>} : memref<1x1x32xf32, #tpu.memory_space<vmem>>, vector<1x1x32xf32>,
    return
  }
  func.func @transform_0(%arg0: i32, %arg1: memref<64xi32, #tpu.memory_space<smem>>, %arg2: memref<64xi32, #tpu.memory_space<smem>>) -> (i32, i32, i32) {
    %0 = arith.index_cast %arg0 : i32 to index
    %1 = memref.load %arg1[%0] : memref<64xi32, #tpu.memory_space<smem>>
    %c0_i32 = arith.constant 0 : i32
    %c0_i32_0 = arith.constant 0 : i32
    %c0_i32_1 = arith.constant 0 : i32
    return %1, %c0_i32, %c0_i32_0 : i32, i32, i32
  }
  func.func @transform_1(%arg0: i32, %arg1: memref<64xi32, #tpu.memory_space<smem>>, %arg2: memref<64xi32, #tpu.memory_space<smem>>) -> (i32, i32, i32) {
    %0 = arith.index_cast %arg0 : i32 to index
    %1 = memref.load %arg2[%0] : memref<64xi32, #tpu.memory_space<smem>>
    %c0_i32 = arith.constant 0 : i32
    %c0_i32_0 = arith.constant 0 : i32
    %c0_i32_1 = arith.constant 0 : i32
    return %1, %c0_i32, %c0_i32_0 : i32, i32, i32
  }
  func.func @transform_2(%arg0: i32, %arg1: memref<64xi32, #tpu.memory_space<smem>>, %arg2: memref<64xi32, #tpu.memory_space<smem>>) -> (i32, i32, i32) {
    %c0_i32 = arith.constant 0 : i32
    %c0_i32_0 = arith.constant 0 : i32
    %c0_i32_1 = arith.constant 0 : i32
    return %arg0, %c0_i32, %c0_i32_0 : i32, i32, i32
  }
  func.func @transform_3(%arg0: i32, %arg1: memref<64xi32, #tpu.memory_space<smem>>, %arg2: memref<64xi32, #tpu.memory_space<smem>>) -> (i32, i32, i32) {
    %c0_i32 = arith.constant 0 : i32
    %c0_i32_0 = arith.constant 0 : i32
    %c0_i32_1 = arith.constant 0 : i32
    return %arg0, %c0_i32, %c0_i32_0 : i32, i32, i32
  }
  func.func @transform_4(%arg0: i32, %arg1: memref<64xi32, #tpu.memory_space<smem>>, %arg2: memref<64xi32, #tpu.memory_space<smem>>) -> (i32, i32) {
    %c0_i32 = arith.constant 0 : i32
    %c0_i32_0 = arith.constant 0 : i32
    %c0_i32_1 = arith.constant 0 : i32
    return %c0_i32, %c0_i32_0 : i32, i32
  }
  func.func @transform_5(%arg0: i32, %arg1: memref<64xi32, #tpu.memory_space<smem>>, %arg2: memref<64xi32, #tpu.memory_space<smem>>) -> (i32, i32) {
    %c0_i32 = arith.constant 0 : i32
    %c0_i32_0 = arith.constant 0 : i32
    %c0_i32_1 = arith.constant 0 : i32
    return %c0_i32, %c0_i32_0 : i32, i32
  }
  func.func @transform_6(%arg0: i32, %arg1: memref<64xi32, #tpu.memory_space<smem>>, %arg2: memref<64xi32, #tpu.memory_space<smem>>) -> (i32, i32) {
    %c0_i32 = arith.constant 0 : i32
    %c0_i32_0 = arith.constant 0 : i32
    %c0_i32_1 = arith.constant 0 : i32
    return %c0_i32, %c0_i32_0 : i32, i32
  }
  func.func @transform_7(%arg0: i32, %arg1: memref<64xi32, #tpu.memory_space<smem>>, %arg2: memref<64xi32, #tpu.memory_space<smem>>) -> (i32, i32, i32) {
    %c0_i32 = arith.constant 0 : i32
    %c0_i32_0 = arith.constant 0 : i32
    %c0_i32_1 = arith.constant 0 : i32
    return %arg0, %c0_i32, %c0_i32_0 : i32, i32, i32
  }
}

module attributes {stable_mosaic.version = 11 : i64} {
  func.func @_matmul_kernel(%arg0: i32, %arg1: i32, %arg2: i32, %arg3: memref<32x128xbf16, #tpu.memory_space<vmem>>, %arg4: memref<128x128xbf16, #tpu.memory_space<vmem>>, %arg5: memref<1x128xf32, #tpu.memory_space<vmem>>, %arg6: memref<32x128xf32, #tpu.memory_space<vmem>>, %arg7: memref<32x128xf32, #tpu.memory_space<vmem>>) attributes {dimension_semantics = [#tpu.dimension_semantics<parallel>, #tpu.dimension_semantics<parallel>, #tpu.dimension_semantics<arbitrary>], iteration_bounds = array<i64: 1, 1, 1>, scalar_prefetch = 0 : i64, scratch_operands = 1 : i64, tpu.core_type = #tpu.core_type<tc>, window_params = [{transform_indices = @transform_0, window_bounds = array<i64: 32, 128>}, {transform_indices = @transform_1, window_bounds = array<i64: 128, 128>}, {transform_indices = @transform_2, window_bounds = array<i64: 1, 128>}, {transform_indices = @transform_3, window_bounds = array<i64: 32, 128>}]} {
    %c0_i32 = arith.constant 0 : i32
    %0 = arith.cmpi eq, %arg2, %c0_i32 : i32
    %1 = arith.extui %0 : i1 to i32
    %c0_i32_0 = arith.constant 0 : i32
    %2 = arith.cmpi ne, %1, %c0_i32_0 : i32
    scf.if %2 {
      %cst_10 = arith.constant 0.000000e+00 : f32
      %12 = vector.broadcast %cst_10 : f32 to vector<32x128xf32>
      %c0_11 = arith.constant 0 : index
      %c0_12 = arith.constant 0 : index
      %13 = vector.load %arg7[%c0_11, %c0_12] : memref<32x128xf32, #tpu.memory_space<vmem>>, vector<32x128xf32>
      tpu.vector_store %arg7[%c0_11, %c0_12], %12 {strides = array<i32>} : memref<32x128xf32, #tpu.memory_space<vmem>>, vector<32x128xf32>,
    } else {
    }
    %c0 = arith.constant 0 : index
    %c0_1 = arith.constant 0 : index
    %3 = vector.load %arg7[%c0, %c0_1] : memref<32x128xf32, #tpu.memory_space<vmem>>, vector<32x128xf32>
    %c0_2 = arith.constant 0 : index
    %c0_3 = arith.constant 0 : index
    %4 = vector.load %arg3[%c0_2, %c0_3] : memref<32x128xbf16, #tpu.memory_space<vmem>>, vector<32x128xbf16>
    %c0_4 = arith.constant 0 : index
    %c0_5 = arith.constant 0 : index
    %5 = vector.load %arg4[%c0_4, %c0_5] : memref<128x128xbf16, #tpu.memory_space<vmem>>, vector<128x128xbf16>
    %cst = arith.constant dense<0.000000e+00> : vector<32x128xf32>
    %6 = tpu.matmul %4, %5, %cst {dimension_numbers = #tpu.dot_dimension_numbers<[1], [0], [0], [1], [0, 0, 1, 1], [], []>} : vector<32x128xbf16>, vector<128x128xbf16>, vector<32x128xf32> -> vector<32x128xf32>
    %7 = arith.addf %3, %6 : vector<32x128xf32>
    %c0_6 = arith.constant 0 : index
    %c0_7 = arith.constant 0 : index
    %8 = vector.load %arg7[%c0_6, %c0_7] : memref<32x128xf32, #tpu.memory_space<vmem>>, vector<32x128xf32>
    tpu.vector_store %arg7[%c0_6, %c0_7], %7 {strides = array<i32>} : memref<32x128xf32, #tpu.memory_space<vmem>>, vector<32x128xf32>,
    %c0_i32_8 = arith.constant 0 : i32
    %9 = arith.cmpi eq, %arg2, %c0_i32_8 : i32
    %10 = arith.extui %9 : i1 to i32
    %c0_i32_9 = arith.constant 0 : i32
    %11 = arith.cmpi ne, %10, %c0_i32_9 : i32
    scf.if %11 {
      %c0_10 = arith.constant 0 : index
      %c0_11 = arith.constant 0 : index
      %12 = vector.load %arg7[%c0_10, %c0_11] : memref<32x128xf32, #tpu.memory_space<vmem>>, vector<32x128xf32>
      %c0_12 = arith.constant 0 : index
      %c0_13 = arith.constant 0 : index
      %13 = vector.load %arg5[%c0_12, %c0_13] : memref<1x128xf32, #tpu.memory_space<vmem>>, vector<1x128xf32>
      %14 = vector.broadcast %13 : vector<1x128xf32> to vector<32x128xf32>
      %15 = arith.addf %12, %14 : vector<32x128xf32>
      %c0_14 = arith.constant 0 : index
      %c0_15 = arith.constant 0 : index
      %16 = vector.load %arg6[%c0_14, %c0_15] : memref<32x128xf32, #tpu.memory_space<vmem>>, vector<32x128xf32>
      tpu.vector_store %arg6[%c0_14, %c0_15], %15 {strides = array<i32>} : memref<32x128xf32, #tpu.memory_space<vmem>>, vector<32x128xf32>,
    } else {
    }
    return
  }
  func.func @transform_0(%arg0: i32, %arg1: i32, %arg2: i32) -> (i32, i32) {
    %c0_i32 = arith.constant 0 : i32
    return %arg0, %arg2 : i32, i32
  }
  func.func @transform_1(%arg0: i32, %arg1: i32, %arg2: i32) -> (i32, i32) {
    %c0_i32 = arith.constant 0 : i32
    return %arg2, %arg1 : i32, i32
  }
  func.func @transform_2(%arg0: i32, %arg1: i32, %arg2: i32) -> (i32, i32) {
    %c0_i32 = arith.constant 0 : i32
    %c0_i32_0 = arith.constant 0 : i32
    return %c0_i32, %arg1 : i32, i32
  }
  func.func @transform_3(%arg0: i32, %arg1: i32, %arg2: i32) -> (i32, i32) {
    %c0_i32 = arith.constant 0 : i32
    return %arg0, %arg1 : i32, i32
  }
}

module attributes {stable_mosaic.version = 11 : i64} {
  func.func @_gcn_node_kernel(%arg0: i32, %arg1: memref<32x32xf32, #tpu.memory_space<vmem>>, %arg2: memref<32x32xf32, #tpu.memory_space<vmem>>, %arg3: memref<32x32xf32, #tpu.memory_space<vmem>>, %arg4: memref<32x32xf32, #tpu.memory_space<vmem>>, %arg5: memref<4x32xf32, #tpu.memory_space<vmem>>, %arg6: memref<32x32xf32, #tpu.memory_space<vmem>>) attributes {dimension_semantics = [#tpu.dimension_semantics<parallel>], iteration_bounds = array<i64: 1>, scalar_prefetch = 0 : i64, scratch_operands = 0 : i64, tpu.core_type = #tpu.core_type<tc>, window_params = [{transform_indices = @transform_0, window_bounds = array<i64: 32, 32>}, {transform_indices = @transform_1, window_bounds = array<i64: 32, 32>}, {transform_indices = @transform_2, window_bounds = array<i64: 32, 32>}, {transform_indices = @transform_3, window_bounds = array<i64: 32, 32>}, {pipeline_mode = #tpu.pipeline_mode<synchronous>, transform_indices = @transform_4, window_bounds = array<i64: 4, 32>}, {transform_indices = @transform_5, window_bounds = array<i64: 32, 32>}]} {
    %c0 = arith.constant 0 : index
    %c0_0 = arith.constant 0 : index
    %0 = vector.load %arg1[%c0, %c0_0] : memref<32x32xf32, #tpu.memory_space<vmem>>, vector<32x32xf32>
    %c0_1 = arith.constant 0 : index
    %c0_2 = arith.constant 0 : index
    %1 = vector.load %arg2[%c0_1, %c0_2] : memref<32x32xf32, #tpu.memory_space<vmem>>, vector<32x32xf32>
    %c0_3 = arith.constant 0 : index
    %c0_4 = arith.constant 0 : index
    %2 = vector.load %arg3[%c0_3, %c0_4] : memref<32x32xf32, #tpu.memory_space<vmem>>, vector<32x32xf32>
    %cst = arith.constant 9.99999997E-7 : f32
    %3 = vector.broadcast %cst : f32 to vector<32x32xf32>
    %4 = arith.addf %2, %3 : vector<32x32xf32>
    %5 = arith.divf %1, %4 : vector<32x32xf32>
    %6 = arith.addf %0, %5 : vector<32x32xf32>
    %c0_5 = arith.constant 0 : index
    %c0_6 = arith.constant 0 : index
    %7 = vector.load %arg5[%c0_5, %c0_6] : memref<4x32xf32, #tpu.memory_space<vmem>>, vector<4x32xf32>
    %8 = vector.extract_strided_slice %7 {offsets = [0, 0], sizes = [1, 32], strides = [1, 1]} : vector<4x32xf32> to vector<1x32xf32>
    %9 = vector.extract_strided_slice %7 {offsets = [1, 0], sizes = [1, 32], strides = [1, 1]} : vector<4x32xf32> to vector<1x32xf32>
    %10 = vector.extract_strided_slice %7 {offsets = [2, 0], sizes = [1, 32], strides = [1, 1]} : vector<4x32xf32> to vector<1x32xf32>
    %11 = vector.extract_strided_slice %7 {offsets = [3, 0], sizes = [1, 32], strides = [1, 1]} : vector<4x32xf32> to vector<1x32xf32>
    %12 = vector.broadcast %10 : vector<1x32xf32> to vector<32x32xf32>
    %13 = arith.subf %6, %12 : vector<32x32xf32>
    %cst_7 = arith.constant 9.99999974E-6 : f32
    %14 = vector.broadcast %cst_7 : f32 to vector<1x32xf32>
    %15 = arith.addf %11, %14 : vector<1x32xf32>
    %16 = math.rsqrt %15 : vector<1x32xf32>
    %17 = vector.broadcast %16 : vector<1x32xf32> to vector<32x32xf32>
    %18 = arith.mulf %13, %17 : vector<32x32xf32>
    %19 = vector.broadcast %8 : vector<1x32xf32> to vector<32x32xf32>
    %20 = arith.mulf %18, %19 : vector<32x32xf32>
    %21 = vector.broadcast %9 : vector<1x32xf32> to vector<32x32xf32>
    %22 = arith.addf %20, %21 : vector<32x32xf32>
    %cst_8 = arith.constant 0.000000e+00 : f32
    %23 = vector.broadcast %cst_8 : f32 to vector<32x32xf32>
    %24 = arith.maximumf %22, %23 : vector<32x32xf32>
    %c0_9 = arith.constant 0 : index
    %c0_10 = arith.constant 0 : index
    %25 = vector.load %arg4[%c0_9, %c0_10] : memref<32x32xf32, #tpu.memory_space<vmem>>, vector<32x32xf32>
    %26 = arith.addf %25, %24 : vector<32x32xf32>
    %c0_11 = arith.constant 0 : index
    %c0_12 = arith.constant 0 : index
    %27 = vector.load %arg6[%c0_11, %c0_12] : memref<32x32xf32, #tpu.memory_space<vmem>>, vector<32x32xf32>
    tpu.vector_store %arg6[%c0_11, %c0_12], %26 {strides = array<i32>} : memref<32x32xf32, #tpu.memory_space<vmem>>, vector<32x32xf32>,
    return
  }
  func.func @transform_0(%arg0: i32) -> (i32, i32) {
    %c0_i32 = arith.constant 0 : i32
    %c0_i32_0 = arith.constant 0 : i32
    return %arg0, %c0_i32 : i32, i32
  }
  func.func @transform_1(%arg0: i32) -> (i32, i32) {
    %c0_i32 = arith.constant 0 : i32
    %c0_i32_0 = arith.constant 0 : i32
    return %arg0, %c0_i32 : i32, i32
  }
  func.func @transform_2(%arg0: i32) -> (i32, i32) {
    %c0_i32 = arith.constant 0 : i32
    %c0_i32_0 = arith.constant 0 : i32
    return %arg0, %c0_i32 : i32, i32
  }
  func.func @transform_3(%arg0: i32) -> (i32, i32) {
    %c0_i32 = arith.constant 0 : i32
    %c0_i32_0 = arith.constant 0 : i32
    return %arg0, %c0_i32 : i32, i32
  }
  func.func @transform_4(%arg0: i32) -> (i32, i32) {
    %c0_i32 = arith.constant 0 : i32
    %c0_i32_0 = arith.constant 0 : i32
    %c0_i32_1 = arith.constant 0 : i32
    return %c0_i32, %c0_i32_0 : i32, i32
  }
  func.func @transform_5(%arg0: i32) -> (i32, i32) {
    %c0_i32 = arith.constant 0 : i32
    %c0_i32_0 = arith.constant 0 : i32
    return %arg0, %c0_i32 : i32, i32
  }
}

module attributes {stable_mosaic.version = 11 : i64} {
  func.func @_gcn_edge_kernel(%arg0: i32, %arg1: memref<64xi32, #tpu.memory_space<smem>>, %arg2: memref<64xi32, #tpu.memory_space<smem>>, %arg3: memref<1x4x32xf32, #tpu.memory_space<vmem>>, %arg4: memref<1x4x32xf32, #tpu.memory_space<vmem>>, %arg5: memref<1x1x32xf32, #tpu.memory_space<vmem>>, %arg6: memref<1x1x32xf32, #tpu.memory_space<vmem>>, %arg7: memref<4x32xf32, #tpu.memory_space<vmem>>, %arg8: memref<1x1x32xf32, #tpu.memory_space<vmem>>, %arg9: memref<32x1x32xf32, #tpu.memory_space<vmem>>, %arg10: memref<32x1x32xf32, #tpu.memory_space<vmem>>) attributes {dimension_semantics = [#tpu.dimension_semantics<arbitrary>], iteration_bounds = array<i64: 64>, scalar_prefetch = 2 : i64, scratch_operands = 0 : i64, tpu.core_type = #tpu.core_type<tc>, window_params = [{transform_indices = @transform_0, window_bounds = array<i64: 1, 4, 32>}, {transform_indices = @transform_1, window_bounds = array<i64: 1, 4, 32>}, {transform_indices = @transform_2, window_bounds = array<i64: 1, 1, 32>}, {transform_indices = @transform_3, window_bounds = array<i64: 1, 1, 32>}, {pipeline_mode = #tpu.pipeline_mode<synchronous>, transform_indices = @transform_4, window_bounds = array<i64: 4, 32>}, {transform_indices = @transform_5, window_bounds = array<i64: 1, 1, 32>}, {pipeline_mode = #tpu.pipeline_mode<synchronous>, transform_indices = @transform_6, window_bounds = array<i64: 32, 1, 32>}, {pipeline_mode = #tpu.pipeline_mode<synchronous>, transform_indices = @transform_7, window_bounds = array<i64: 32, 1, 32>}]} {
    %c0_i32 = arith.constant 0 : i32
    %0 = arith.cmpi eq, %arg0, %c0_i32 : i32
    %1 = arith.extui %0 : i1 to i32
    %c0_i32_0 = arith.constant 0 : i32
    %2 = arith.cmpi ne, %1, %c0_i32_0 : i32
    scf.if %2 {
      %cst_27 = arith.constant 0.000000e+00 : f32
      %58 = vector.broadcast %cst_27 : f32 to vector<32x1x32xf32>
      %c0_28 = arith.constant 0 : index
      %c0_29 = arith.constant 0 : index
      %c0_30 = arith.constant 0 : index
      %59 = vector.load %arg9[%c0_28, %c0_29, %c0_30] : memref<32x1x32xf32, #tpu.memory_space<vmem>>, vector<32x1x32xf32>
      tpu.vector_store %arg9[%c0_28, %c0_29, %c0_30], %58 {strides = array<i32>} : memref<32x1x32xf32, #tpu.memory_space<vmem>>, vector<32x1x32xf32>,
      %cst_31 = arith.constant 0.000000e+00 : f32
      %60 = vector.broadcast %cst_31 : f32 to vector<32x1x32xf32>
      %c0_32 = arith.constant 0 : index
      %c0_33 = arith.constant 0 : index
      %c0_34 = arith.constant 0 : index
      %61 = vector.load %arg10[%c0_32, %c0_33, %c0_34] : memref<32x1x32xf32, #tpu.memory_space<vmem>>, vector<32x1x32xf32>
      tpu.vector_store %arg10[%c0_32, %c0_33, %c0_34], %60 {strides = array<i32>} : memref<32x1x32xf32, #tpu.memory_space<vmem>>, vector<32x1x32xf32>,
    } else {
    }
    %c0 = arith.constant 0 : index
    %c0_1 = arith.constant 0 : index
    %c0_2 = arith.constant 0 : index
    %3 = vector.load %arg3[%c0, %c0_1, %c0_2] : memref<1x4x32xf32, #tpu.memory_space<vmem>>, vector<1x4x32xf32>
    %4 = vector.shape_cast %3 : vector<1x4x32xf32> to vector<4x32xf32>
    %c0_3 = arith.constant 0 : index
    %c0_4 = arith.constant 0 : index
    %c0_5 = arith.constant 0 : index
    %5 = vector.load %arg4[%c0_3, %c0_4, %c0_5] : memref<1x4x32xf32, #tpu.memory_space<vmem>>, vector<1x4x32xf32>
    %6 = vector.shape_cast %5 : vector<1x4x32xf32> to vector<4x32xf32>
    %7 = vector.extract_strided_slice %4 {offsets = [1, 0], sizes = [1, 32], strides = [1, 1]} : vector<4x32xf32> to vector<1x32xf32>
    %8 = vector.extract_strided_slice %4 {offsets = [2, 0], sizes = [1, 32], strides = [1, 1]} : vector<4x32xf32> to vector<1x32xf32>
    %9 = vector.extract_strided_slice %6 {offsets = [3, 0], sizes = [1, 32], strides = [1, 1]} : vector<4x32xf32> to vector<1x32xf32>
    %c0_6 = arith.constant 0 : index
    %c0_7 = arith.constant 0 : index
    %c0_8 = arith.constant 0 : index
    %10 = vector.load %arg5[%c0_6, %c0_7, %c0_8] : memref<1x1x32xf32, #tpu.memory_space<vmem>>, vector<1x1x32xf32>
    %11 = vector.shape_cast %10 : vector<1x1x32xf32> to vector<1x32xf32>
    %12 = arith.addf %11, %8 : vector<1x32xf32>
    %13 = arith.addf %12, %9 : vector<1x32xf32>
    %14 = arith.negf %13 : vector<1x32xf32>
    %15 = math.exp %14 : vector<1x32xf32>
    %cst = arith.constant 1.000000e+00 : f32
    %16 = vector.broadcast %cst : f32 to vector<1x32xf32>
    %17 = arith.addf %16, %15 : vector<1x32xf32>
    %18 = arith.divf %16, %17 : vector<1x32xf32>
    %19 = arith.mulf %18, %7 : vector<1x32xf32>
    %20 = arith.index_cast %arg0 : i32 to index
    %21 = memref.load %arg2[%20] : memref<64xi32, #tpu.memory_space<smem>>
    %22 = arith.index_cast %21 : i32 to index
    %c0_9 = arith.constant 0 : index
    %c0_10 = arith.constant 0 : index
    %23 = vector.load %arg9[%22, %c0_9, %c0_10] : memref<32x1x32xf32, #tpu.memory_space<vmem>>, vector<1x1x32xf32>
    %24 = vector.shape_cast %23 : vector<1x1x32xf32> to vector<1x32xf32>
    %25 = arith.addf %24, %19 : vector<1x32xf32>
    %26 = arith.index_cast %21 : i32 to index
    %c0_11 = arith.constant 0 : index
    %c0_12 = arith.constant 0 : index
    %27 = vector.load %arg9[%26, %c0_11, %c0_12] : memref<32x1x32xf32, #tpu.memory_space<vmem>>, vector<1x1x32xf32>
    %28 = vector.shape_cast %27 : vector<1x1x32xf32> to vector<1x32xf32>
    %29 = vector.shape_cast %25 : vector<1x32xf32> to vector<1x1x32xf32>
    tpu.vector_store %arg9[%26, %c0_11, %c0_12], %29 {strides = array<i32>} : memref<32x1x32xf32, #tpu.memory_space<vmem>>, vector<1x1x32xf32>,
    %30 = arith.index_cast %21 : i32 to index
    %c0_13 = arith.constant 0 : index
    %c0_14 = arith.constant 0 : index
    %31 = vector.load %arg10[%30, %c0_13, %c0_14] : memref<32x1x32xf32, #tpu.memory_space<vmem>>, vector<1x1x32xf32>
    %32 = vector.shape_cast %31 : vector<1x1x32xf32> to vector<1x32xf32>
    %33 = arith.addf %32, %18 : vector<1x32xf32>
    %34 = arith.index_cast %21 : i32 to index
    %c0_15 = arith.constant 0 : index
    %c0_16 = arith.constant 0 : index
    %35 = vector.load %arg10[%34, %c0_15, %c0_16] : memref<32x1x32xf32, #tpu.memory_space<vmem>>, vector<1x1x32xf32>
    %36 = vector.shape_cast %35 : vector<1x1x32xf32> to vector<1x32xf32>
    %37 = vector.shape_cast %33 : vector<1x32xf32> to vector<1x1x32xf32>
    tpu.vector_store %arg10[%34, %c0_15, %c0_16], %37 {strides = array<i32>} : memref<32x1x32xf32, #tpu.memory_space<vmem>>, vector<1x1x32xf32>,
    %c0_17 = arith.constant 0 : index
    %c0_18 = arith.constant 0 : index
    %38 = vector.load %arg7[%c0_17, %c0_18] : memref<4x32xf32, #tpu.memory_space<vmem>>, vector<4x32xf32>
    %39 = vector.extract_strided_slice %38 {offsets = [0, 0], sizes = [1, 32], strides = [1, 1]} : vector<4x32xf32> to vector<1x32xf32>
    %40 = vector.extract_strided_slice %38 {offsets = [1, 0], sizes = [1, 32], strides = [1, 1]} : vector<4x32xf32> to vector<1x32xf32>
    %41 = vector.extract_strided_slice %38 {offsets = [2, 0], sizes = [1, 32], strides = [1, 1]} : vector<4x32xf32> to vector<1x32xf32>
    %42 = vector.extract_strided_slice %38 {offsets = [3, 0], sizes = [1, 32], strides = [1, 1]} : vector<4x32xf32> to vector<1x32xf32>
    %43 = arith.subf %13, %41 : vector<1x32xf32>
    %cst_19 = arith.constant 9.99999974E-6 : f32
    %44 = vector.broadcast %cst_19 : f32 to vector<1x32xf32>
    %45 = arith.addf %42, %44 : vector<1x32xf32>
    %46 = math.rsqrt %45 : vector<1x32xf32>
    %47 = arith.mulf %43, %46 : vector<1x32xf32>
    %48 = arith.mulf %47, %39 : vector<1x32xf32>
    %49 = arith.addf %48, %40 : vector<1x32xf32>
    %cst_20 = arith.constant 0.000000e+00 : f32
    %50 = vector.broadcast %cst_20 : f32 to vector<1x32xf32>
    %51 = arith.maximumf %49, %50 : vector<1x32xf32>
    %c0_21 = arith.constant 0 : index
    %c0_22 = arith.constant 0 : index
    %c0_23 = arith.constant 0 : index
    %52 = vector.load %arg6[%c0_21, %c0_22, %c0_23] : memref<1x1x32xf32, #tpu.memory_space<vmem>>, vector<1x1x32xf32>
    %53 = vector.shape_cast %52 : vector<1x1x32xf32> to vector<1x32xf32>
    %54 = arith.addf %53, %51 : vector<1x32xf32>
    %c0_24 = arith.constant 0 : index
    %c0_25 = arith.constant 0 : index
    %c0_26 = arith.constant 0 : index
    %55 = vector.load %arg8[%c0_24, %c0_25, %c0_26] : memref<1x1x32xf32, #tpu.memory_space<vmem>>, vector<1x1x32xf32>
    %56 = vector.shape_cast %55 : vector<1x1x32xf32> to vector<1x32xf32>
    %57 = vector.shape_cast %54 : vector<1x32xf32> to vector<1x1x32xf32>
    tpu.vector_store %arg8[%c0_24, %c0_25, %c0_26], %57 {strides = array<i32>} : memref<1x1x32xf32, #tpu.memory_space<vmem>>, vector<1x1x32xf32>,
    return
  }
  func.func @transform_0(%arg0: i32, %arg1: memref<64xi32, #tpu.memory_space<smem>>, %arg2: memref<64xi32, #tpu.memory_space<smem>>) -> (i32, i32, i32) {
    %0 = arith.index_cast %arg0 : i32 to index
    %1 = memref.load %arg1[%0] : memref<64xi32, #tpu.memory_space<smem>>
    %c0_i32 = arith.constant 0 : i32
    %c0_i32_0 = arith.constant 0 : i32
    %c0_i32_1 = arith.constant 0 : i32
    return %1, %c0_i32, %c0_i32_0 : i32, i32, i32
  }
  func.func @transform_1(%arg0: i32, %arg1: memref<64xi32, #tpu.memory_space<smem>>, %arg2: memref<64xi32, #tpu.memory_space<smem>>) -> (i32, i32, i32) {
    %0 = arith.index_cast %arg0 : i32 to index
    %1 = memref.load %arg2[%0] : memref<64xi32, #tpu.memory_space<smem>>
    %c0_i32 = arith.constant 0 : i32
    %c0_i32_0 = arith.constant 0 : i32
    %c0_i32_1 = arith.constant 0 : i32
    return %1, %c0_i32, %c0_i32_0 : i32, i32, i32
  }
  func.func @transform_2(%arg0: i32, %arg1: memref<64xi32, #tpu.memory_space<smem>>, %arg2: memref<64xi32, #tpu.memory_space<smem>>) -> (i32, i32, i32) {
    %c0_i32 = arith.constant 0 : i32
    %c0_i32_0 = arith.constant 0 : i32
    %c0_i32_1 = arith.constant 0 : i32
    return %arg0, %c0_i32, %c0_i32_0 : i32, i32, i32
  }
  func.func @transform_3(%arg0: i32, %arg1: memref<64xi32, #tpu.memory_space<smem>>, %arg2: memref<64xi32, #tpu.memory_space<smem>>) -> (i32, i32, i32) {
    %c0_i32 = arith.constant 0 : i32
    %c0_i32_0 = arith.constant 0 : i32
    %c0_i32_1 = arith.constant 0 : i32
    return %arg0, %c0_i32, %c0_i32_0 : i32, i32, i32
  }
  func.func @transform_4(%arg0: i32, %arg1: memref<64xi32, #tpu.memory_space<smem>>, %arg2: memref<64xi32, #tpu.memory_space<smem>>) -> (i32, i32) {
    %c0_i32 = arith.constant 0 : i32
    %c0_i32_0 = arith.constant 0 : i32
    %c0_i32_1 = arith.constant 0 : i32
    return %c0_i32, %c0_i32_0 : i32, i32
  }
  func.func @transform_5(%arg0: i32, %arg1: memref<64xi32, #tpu.memory_space<smem>>, %arg2: memref<64xi32, #tpu.memory_space<smem>>) -> (i32, i32, i32) {
    %c0_i32 = arith.constant 0 : i32
    %c0_i32_0 = arith.constant 0 : i32
    %c0_i32_1 = arith.constant 0 : i32
    return %arg0, %c0_i32, %c0_i32_0 : i32, i32, i32
  }
  func.func @transform_6(%arg0: i32, %arg1: memref<64xi32, #tpu.memory_space<smem>>, %arg2: memref<64xi32, #tpu.memory_space<smem>>) -> (i32, i32, i32) {
    %c0_i32 = arith.constant 0 : i32
    %c0_i32_0 = arith.constant 0 : i32
    %c0_i32_1 = arith.constant 0 : i32
    %c0_i32_2 = arith.constant 0 : i32
    return %c0_i32, %c0_i32_0, %c0_i32_1 : i32, i32, i32
  }
  func.func @transform_7(%arg0: i32, %arg1: memref<64xi32, #tpu.memory_space<smem>>, %arg2: memref<64xi32, #tpu.memory_space<smem>>) -> (i32, i32, i32) {
    %c0_i32 = arith.constant 0 : i32
    %c0_i32_0 = arith.constant 0 : i32
    %c0_i32_1 = arith.constant 0 : i32
    %c0_i32_2 = arith.constant 0 : i32
    return %c0_i32, %c0_i32_0, %c0_i32_1 : i32, i32, i32
  }
}

module attributes {stable_mosaic.version = 11 : i64} {
  func.func @_gcn_edge_kernel(%arg0: i32, %arg1: memref<64xi32, #tpu.memory_space<smem>>, %arg2: memref<64xi32, #tpu.memory_space<smem>>, %arg3: memref<1x4x32xf32, #tpu.memory_space<vmem>>, %arg4: memref<1x4x32xf32, #tpu.memory_space<vmem>>, %arg5: memref<1x1x32xf32, #tpu.memory_space<vmem>>, %arg6: memref<1x1x32xf32, #tpu.memory_space<vmem>>, %arg7: memref<4x32xf32, #tpu.memory_space<vmem>>, %arg8: memref<1x1x32xf32, #tpu.memory_space<vmem>>, %arg9: memref<32x1x32xf32, #tpu.memory_space<vmem>>, %arg10: memref<32x1x32xf32, #tpu.memory_space<vmem>>) attributes {dimension_semantics = [#tpu.dimension_semantics<arbitrary>], iteration_bounds = array<i64: 64>, scalar_prefetch = 2 : i64, scratch_operands = 0 : i64, tpu.core_type = #tpu.core_type<tc>, window_params = [{transform_indices = @transform_0, window_bounds = array<i64: 1, 4, 32>}, {transform_indices = @transform_1, window_bounds = array<i64: 1, 4, 32>}, {transform_indices = @transform_2, window_bounds = array<i64: 1, 1, 32>}, {transform_indices = @transform_3, window_bounds = array<i64: 1, 1, 32>}, {pipeline_mode = #tpu.pipeline_mode<synchronous>, transform_indices = @transform_4, window_bounds = array<i64: 4, 32>}, {transform_indices = @transform_5, window_bounds = array<i64: 1, 1, 32>}, {pipeline_mode = #tpu.pipeline_mode<synchronous>, transform_indices = @transform_6, window_bounds = array<i64: 32, 1, 32>}, {pipeline_mode = #tpu.pipeline_mode<synchronous>, transform_indices = @transform_7, window_bounds = array<i64: 32, 1, 32>}]} {
    %c0_i32 = arith.constant 0 : i32
    %0 = arith.cmpi eq, %arg0, %c0_i32 : i32
    %1 = arith.extui %0 : i1 to i32
    %c0_i32_0 = arith.constant 0 : i32
    %2 = arith.cmpi ne, %1, %c0_i32_0 : i32
    scf.if %2 {
      %cst_27 = arith.constant 0.000000e+00 : f32
      %58 = vector.broadcast %cst_27 : f32 to vector<32x1x32xf32>
      %c0_28 = arith.constant 0 : index
      %c0_29 = arith.constant 0 : index
      %c0_30 = arith.constant 0 : index
      %59 = vector.load %arg9[%c0_28, %c0_29, %c0_30] : memref<32x1x32xf32, #tpu.memory_space<vmem>>, vector<32x1x32xf32>
      tpu.vector_store %arg9[%c0_28, %c0_29, %c0_30], %58 {strides = array<i32>} : memref<32x1x32xf32, #tpu.memory_space<vmem>>, vector<32x1x32xf32>,
      %cst_31 = arith.constant 0.000000e+00 : f32
      %60 = vector.broadcast %cst_31 : f32 to vector<32x1x32xf32>
      %c0_32 = arith.constant 0 : index
      %c0_33 = arith.constant 0 : index
      %c0_34 = arith.constant 0 : index
      %61 = vector.load %arg10[%c0_32, %c0_33, %c0_34] : memref<32x1x32xf32, #tpu.memory_space<vmem>>, vector<32x1x32xf32>
      tpu.vector_store %arg10[%c0_32, %c0_33, %c0_34], %60 {strides = array<i32>} : memref<32x1x32xf32, #tpu.memory_space<vmem>>, vector<32x1x32xf32>,
    } else {
    }
    %c0 = arith.constant 0 : index
    %c0_1 = arith.constant 0 : index
    %c0_2 = arith.constant 0 : index
    %3 = vector.load %arg3[%c0, %c0_1, %c0_2] : memref<1x4x32xf32, #tpu.memory_space<vmem>>, vector<1x4x32xf32>
    %4 = vector.shape_cast %3 : vector<1x4x32xf32> to vector<4x32xf32>
    %c0_3 = arith.constant 0 : index
    %c0_4 = arith.constant 0 : index
    %c0_5 = arith.constant 0 : index
    %5 = vector.load %arg4[%c0_3, %c0_4, %c0_5] : memref<1x4x32xf32, #tpu.memory_space<vmem>>, vector<1x4x32xf32>
    %6 = vector.shape_cast %5 : vector<1x4x32xf32> to vector<4x32xf32>
    %7 = vector.extract_strided_slice %4 {offsets = [1, 0], sizes = [1, 32], strides = [1, 1]} : vector<4x32xf32> to vector<1x32xf32>
    %8 = vector.extract_strided_slice %4 {offsets = [2, 0], sizes = [1, 32], strides = [1, 1]} : vector<4x32xf32> to vector<1x32xf32>
    %9 = vector.extract_strided_slice %6 {offsets = [3, 0], sizes = [1, 32], strides = [1, 1]} : vector<4x32xf32> to vector<1x32xf32>
    %c0_6 = arith.constant 0 : index
    %c0_7 = arith.constant 0 : index
    %c0_8 = arith.constant 0 : index
    %10 = vector.load %arg5[%c0_6, %c0_7, %c0_8] : memref<1x1x32xf32, #tpu.memory_space<vmem>>, vector<1x1x32xf32>
    %11 = vector.shape_cast %10 : vector<1x1x32xf32> to vector<1x32xf32>
    %12 = arith.addf %11, %8 : vector<1x32xf32>
    %13 = arith.addf %12, %9 : vector<1x32xf32>
    %14 = arith.negf %13 : vector<1x32xf32>
    %15 = math.exp %14 : vector<1x32xf32>
    %cst = arith.constant 1.000000e+00 : f32
    %16 = vector.broadcast %cst : f32 to vector<1x32xf32>
    %17 = arith.addf %16, %15 : vector<1x32xf32>
    %18 = arith.divf %16, %17 : vector<1x32xf32>
    %19 = arith.mulf %18, %7 : vector<1x32xf32>
    %20 = arith.index_cast %arg0 : i32 to index
    %21 = memref.load %arg2[%20] : memref<64xi32, #tpu.memory_space<smem>>
    %22 = arith.index_cast %21 : i32 to index
    %c0_9 = arith.constant 0 : index
    %c0_10 = arith.constant 0 : index
    %23 = vector.load %arg9[%22, %c0_9, %c0_10] : memref<32x1x32xf32, #tpu.memory_space<vmem>>, vector<1x1x32xf32>
    %24 = vector.shape_cast %23 : vector<1x1x32xf32> to vector<1x32xf32>
    %25 = arith.addf %24, %19 : vector<1x32xf32>
    %26 = arith.index_cast %21 : i32 to index
    %c0_11 = arith.constant 0 : index
    %c0_12 = arith.constant 0 : index
    %27 = vector.load %arg9[%26, %c0_11, %c0_12] : memref<32x1x32xf32, #tpu.memory_space<vmem>>, vector<1x1x32xf32>
    %28 = vector.shape_cast %27 : vector<1x1x32xf32> to vector<1x32xf32>
    %29 = vector.shape_cast %25 : vector<1x32xf32> to vector<1x1x32xf32>
    tpu.vector_store %arg9[%26, %c0_11, %c0_12], %29 {strides = array<i32>} : memref<32x1x32xf32, #tpu.memory_space<vmem>>, vector<1x1x32xf32>,
    %30 = arith.index_cast %21 : i32 to index
    %c0_13 = arith.constant 0 : index
    %c0_14 = arith.constant 0 : index
    %31 = vector.load %arg10[%30, %c0_13, %c0_14] : memref<32x1x32xf32, #tpu.memory_space<vmem>>, vector<1x1x32xf32>
    %32 = vector.shape_cast %31 : vector<1x1x32xf32> to vector<1x32xf32>
    %33 = arith.addf %32, %18 : vector<1x32xf32>
    %34 = arith.index_cast %21 : i32 to index
    %c0_15 = arith.constant 0 : index
    %c0_16 = arith.constant 0 : index
    %35 = vector.load %arg10[%34, %c0_15, %c0_16] : memref<32x1x32xf32, #tpu.memory_space<vmem>>, vector<1x1x32xf32>
    %36 = vector.shape_cast %35 : vector<1x1x32xf32> to vector<1x32xf32>
    %37 = vector.shape_cast %33 : vector<1x32xf32> to vector<1x1x32xf32>
    tpu.vector_store %arg10[%34, %c0_15, %c0_16], %37 {strides = array<i32>} : memref<32x1x32xf32, #tpu.memory_space<vmem>>, vector<1x1x32xf32>,
    %c0_17 = arith.constant 0 : index
    %c0_18 = arith.constant 0 : index
    %38 = vector.load %arg7[%c0_17, %c0_18] : memref<4x32xf32, #tpu.memory_space<vmem>>, vector<4x32xf32>
    %39 = vector.extract_strided_slice %38 {offsets = [0, 0], sizes = [1, 32], strides = [1, 1]} : vector<4x32xf32> to vector<1x32xf32>
    %40 = vector.extract_strided_slice %38 {offsets = [1, 0], sizes = [1, 32], strides = [1, 1]} : vector<4x32xf32> to vector<1x32xf32>
    %41 = vector.extract_strided_slice %38 {offsets = [2, 0], sizes = [1, 32], strides = [1, 1]} : vector<4x32xf32> to vector<1x32xf32>
    %42 = vector.extract_strided_slice %38 {offsets = [3, 0], sizes = [1, 32], strides = [1, 1]} : vector<4x32xf32> to vector<1x32xf32>
    %43 = arith.subf %13, %41 : vector<1x32xf32>
    %cst_19 = arith.constant 9.99999974E-6 : f32
    %44 = vector.broadcast %cst_19 : f32 to vector<1x32xf32>
    %45 = arith.addf %42, %44 : vector<1x32xf32>
    %46 = math.rsqrt %45 : vector<1x32xf32>
    %47 = arith.mulf %43, %46 : vector<1x32xf32>
    %48 = arith.mulf %47, %39 : vector<1x32xf32>
    %49 = arith.addf %48, %40 : vector<1x32xf32>
    %cst_20 = arith.constant 0.000000e+00 : f32
    %50 = vector.broadcast %cst_20 : f32 to vector<1x32xf32>
    %51 = arith.maximumf %49, %50 : vector<1x32xf32>
    %c0_21 = arith.constant 0 : index
    %c0_22 = arith.constant 0 : index
    %c0_23 = arith.constant 0 : index
    %52 = vector.load %arg6[%c0_21, %c0_22, %c0_23] : memref<1x1x32xf32, #tpu.memory_space<vmem>>, vector<1x1x32xf32>
    %53 = vector.shape_cast %52 : vector<1x1x32xf32> to vector<1x32xf32>
    %54 = arith.addf %53, %51 : vector<1x32xf32>
    %c0_24 = arith.constant 0 : index
    %c0_25 = arith.constant 0 : index
    %c0_26 = arith.constant 0 : index
    %55 = vector.load %arg8[%c0_24, %c0_25, %c0_26] : memref<1x1x32xf32, #tpu.memory_space<vmem>>, vector<1x1x32xf32>
    %56 = vector.shape_cast %55 : vector<1x1x32xf32> to vector<1x32xf32>
    %57 = vector.shape_cast %54 : vector<1x32xf32> to vector<1x1x32xf32>
    tpu.vector_store %arg8[%c0_24, %c0_25, %c0_26], %57 {strides = array<i32>} : memref<1x1x32xf32, #tpu.memory_space<vmem>>, vector<1x1x32xf32>,
    return
  }
  func.func @transform_0(%arg0: i32, %arg1: memref<64xi32, #tpu.memory_space<smem>>, %arg2: memref<64xi32, #tpu.memory_space<smem>>) -> (i32, i32, i32) {
    %0 = arith.index_cast %arg0 : i32 to index
    %1 = memref.load %arg1[%0] : memref<64xi32, #tpu.memory_space<smem>>
    %c0_i32 = arith.constant 0 : i32
    %c0_i32_0 = arith.constant 0 : i32
    %c0_i32_1 = arith.constant 0 : i32
    return %1, %c0_i32, %c0_i32_0 : i32, i32, i32
  }
  func.func @transform_1(%arg0: i32, %arg1: memref<64xi32, #tpu.memory_space<smem>>, %arg2: memref<64xi32, #tpu.memory_space<smem>>) -> (i32, i32, i32) {
    %0 = arith.index_cast %arg0 : i32 to index
    %1 = memref.load %arg2[%0] : memref<64xi32, #tpu.memory_space<smem>>
    %c0_i32 = arith.constant 0 : i32
    %c0_i32_0 = arith.constant 0 : i32
    %c0_i32_1 = arith.constant 0 : i32
    return %1, %c0_i32, %c0_i32_0 : i32, i32, i32
  }
  func.func @transform_2(%arg0: i32, %arg1: memref<64xi32, #tpu.memory_space<smem>>, %arg2: memref<64xi32, #tpu.memory_space<smem>>) -> (i32, i32, i32) {
    %c0_i32 = arith.constant 0 : i32
    %c0_i32_0 = arith.constant 0 : i32
    %c0_i32_1 = arith.constant 0 : i32
    return %arg0, %c0_i32, %c0_i32_0 : i32, i32, i32
  }
  func.func @transform_3(%arg0: i32, %arg1: memref<64xi32, #tpu.memory_space<smem>>, %arg2: memref<64xi32, #tpu.memory_space<smem>>) -> (i32, i32, i32) {
    %c0_i32 = arith.constant 0 : i32
    %c0_i32_0 = arith.constant 0 : i32
    %c0_i32_1 = arith.constant 0 : i32
    return %arg0, %c0_i32, %c0_i32_0 : i32, i32, i32
  }
  func.func @transform_4(%arg0: i32, %arg1: memref<64xi32, #tpu.memory_space<smem>>, %arg2: memref<64xi32, #tpu.memory_space<smem>>) -> (i32, i32) {
    %c0_i32 = arith.constant 0 : i32
    %c0_i32_0 = arith.constant 0 : i32
    %c0_i32_1 = arith.constant 0 : i32
    return %c0_i32, %c0_i32_0 : i32, i32
  }
  func.func @transform_5(%arg0: i32, %arg1: memref<64xi32, #tpu.memory_space<smem>>, %arg2: memref<64xi32, #tpu.memory_space<smem>>) -> (i32, i32, i32) {
    %c0_i32 = arith.constant 0 : i32
    %c0_i32_0 = arith.constant 0 : i32
    %c0_i32_1 = arith.constant 0 : i32
    return %arg0, %c0_i32, %c0_i32_0 : i32, i32, i32
  }
  func.func @transform_6(%arg0: i32, %arg1: memref<64xi32, #tpu.memory_space<smem>>, %arg2: memref<64xi32, #tpu.memory_space<smem>>) -> (i32, i32, i32) {
    %c0_i32 = arith.constant 0 : i32
    %c0_i32_0 = arith.constant 0 : i32
    %c0_i32_1 = arith.constant 0 : i32
    %c0_i32_2 = arith.constant 0 : i32
    return %c0_i32, %c0_i32_0, %c0_i32_1 : i32, i32, i32
  }
  func.func @transform_7(%arg0: i32, %arg1: memref<64xi32, #tpu.memory_space<smem>>, %arg2: memref<64xi32, #tpu.memory_space<smem>>) -> (i32, i32, i32) {
    %c0_i32 = arith.constant 0 : i32
    %c0_i32_0 = arith.constant 0 : i32
    %c0_i32_1 = arith.constant 0 : i32
    %c0_i32_2 = arith.constant 0 : i32
    return %c0_i32, %c0_i32_0, %c0_i32_1 : i32, i32, i32
  }
}

module attributes {stable_mosaic.version = 11 : i64} {
  func.func @_gcn_node_kernel(%arg0: i32, %arg1: memref<32x32xf32, #tpu.memory_space<vmem>>, %arg2: memref<32x32xf32, #tpu.memory_space<vmem>>, %arg3: memref<32x32xf32, #tpu.memory_space<vmem>>, %arg4: memref<32x32xf32, #tpu.memory_space<vmem>>, %arg5: memref<4x32xf32, #tpu.memory_space<vmem>>, %arg6: memref<32x32xf32, #tpu.memory_space<vmem>>) attributes {dimension_semantics = [#tpu.dimension_semantics<parallel>], iteration_bounds = array<i64: 1>, scalar_prefetch = 0 : i64, scratch_operands = 0 : i64, tpu.core_type = #tpu.core_type<tc>, window_params = [{transform_indices = @transform_0, window_bounds = array<i64: 32, 32>}, {transform_indices = @transform_1, window_bounds = array<i64: 32, 32>}, {transform_indices = @transform_2, window_bounds = array<i64: 32, 32>}, {transform_indices = @transform_3, window_bounds = array<i64: 32, 32>}, {pipeline_mode = #tpu.pipeline_mode<synchronous>, transform_indices = @transform_4, window_bounds = array<i64: 4, 32>}, {transform_indices = @transform_5, window_bounds = array<i64: 32, 32>}]} {
    %c0 = arith.constant 0 : index
    %c0_0 = arith.constant 0 : index
    %0 = vector.load %arg1[%c0, %c0_0] : memref<32x32xf32, #tpu.memory_space<vmem>>, vector<32x32xf32>
    %c0_1 = arith.constant 0 : index
    %c0_2 = arith.constant 0 : index
    %1 = vector.load %arg2[%c0_1, %c0_2] : memref<32x32xf32, #tpu.memory_space<vmem>>, vector<32x32xf32>
    %c0_3 = arith.constant 0 : index
    %c0_4 = arith.constant 0 : index
    %2 = vector.load %arg3[%c0_3, %c0_4] : memref<32x32xf32, #tpu.memory_space<vmem>>, vector<32x32xf32>
    %cst = arith.constant 9.99999997E-7 : f32
    %3 = vector.broadcast %cst : f32 to vector<32x32xf32>
    %4 = arith.addf %2, %3 : vector<32x32xf32>
    %5 = arith.divf %1, %4 : vector<32x32xf32>
    %6 = arith.addf %0, %5 : vector<32x32xf32>
    %c0_5 = arith.constant 0 : index
    %c0_6 = arith.constant 0 : index
    %7 = vector.load %arg5[%c0_5, %c0_6] : memref<4x32xf32, #tpu.memory_space<vmem>>, vector<4x32xf32>
    %8 = vector.extract_strided_slice %7 {offsets = [0, 0], sizes = [1, 32], strides = [1, 1]} : vector<4x32xf32> to vector<1x32xf32>
    %9 = vector.extract_strided_slice %7 {offsets = [1, 0], sizes = [1, 32], strides = [1, 1]} : vector<4x32xf32> to vector<1x32xf32>
    %10 = vector.extract_strided_slice %7 {offsets = [2, 0], sizes = [1, 32], strides = [1, 1]} : vector<4x32xf32> to vector<1x32xf32>
    %11 = vector.extract_strided_slice %7 {offsets = [3, 0], sizes = [1, 32], strides = [1, 1]} : vector<4x32xf32> to vector<1x32xf32>
    %12 = vector.broadcast %10 : vector<1x32xf32> to vector<32x32xf32>
    %13 = arith.subf %6, %12 : vector<32x32xf32>
    %cst_7 = arith.constant 9.99999974E-6 : f32
    %14 = vector.broadcast %cst_7 : f32 to vector<1x32xf32>
    %15 = arith.addf %11, %14 : vector<1x32xf32>
    %16 = math.rsqrt %15 : vector<1x32xf32>
    %17 = vector.broadcast %16 : vector<1x32xf32> to vector<32x32xf32>
    %18 = arith.mulf %13, %17 : vector<32x32xf32>
    %19 = vector.broadcast %8 : vector<1x32xf32> to vector<32x32xf32>
    %20 = arith.mulf %18, %19 : vector<32x32xf32>
    %21 = vector.broadcast %9 : vector<1x32xf32> to vector<32x32xf32>
    %22 = arith.addf %20, %21 : vector<32x32xf32>
    %cst_8 = arith.constant 0.000000e+00 : f32
    %23 = vector.broadcast %cst_8 : f32 to vector<32x32xf32>
    %24 = arith.maximumf %22, %23 : vector<32x32xf32>
    %c0_9 = arith.constant 0 : index
    %c0_10 = arith.constant 0 : index
    %25 = vector.load %arg4[%c0_9, %c0_10] : memref<32x32xf32, #tpu.memory_space<vmem>>, vector<32x32xf32>
    %26 = arith.addf %25, %24 : vector<32x32xf32>
    %c0_11 = arith.constant 0 : index
    %c0_12 = arith.constant 0 : index
    %27 = vector.load %arg6[%c0_11, %c0_12] : memref<32x32xf32, #tpu.memory_space<vmem>>, vector<32x32xf32>
    tpu.vector_store %arg6[%c0_11, %c0_12], %26 {strides = array<i32>} : memref<32x32xf32, #tpu.memory_space<vmem>>, vector<32x32xf32>,
    return
  }
  func.func @transform_0(%arg0: i32) -> (i32, i32) {
    %c0_i32 = arith.constant 0 : i32
    %c0_i32_0 = arith.constant 0 : i32
    return %arg0, %c0_i32 : i32, i32
  }
  func.func @transform_1(%arg0: i32) -> (i32, i32) {
    %c0_i32 = arith.constant 0 : i32
    %c0_i32_0 = arith.constant 0 : i32
    return %arg0, %c0_i32 : i32, i32
  }
  func.func @transform_2(%arg0: i32) -> (i32, i32) {
    %c0_i32 = arith.constant 0 : i32
    %c0_i32_0 = arith.constant 0 : i32
    return %arg0, %c0_i32 : i32, i32
  }
  func.func @transform_3(%arg0: i32) -> (i32, i32) {
    %c0_i32 = arith.constant 0 : i32
    %c0_i32_0 = arith.constant 0 : i32
    return %arg0, %c0_i32 : i32, i32
  }
  func.func @transform_4(%arg0: i32) -> (i32, i32) {
    %c0_i32 = arith.constant 0 : i32
    %c0_i32_0 = arith.constant 0 : i32
    %c0_i32_1 = arith.constant 0 : i32
    return %c0_i32, %c0_i32_0 : i32, i32
  }
  func.func @transform_5(%arg0: i32) -> (i32, i32) {
    %c0_i32 = arith.constant 0 : i32
    %c0_i32_0 = arith.constant 0 : i32
    return %arg0, %c0_i32 : i32, i32
  }
}

</mosaic_0001>

<bundles_post_ra>
// kernel: gated_gcn_net_forward.14
= control target key start
LH: loop header
LB: loop body
LE: loop exit
PB: predicated region body
PF: predicated region fallthrough
CT: control target
= control target key end

     0   :  { %v212_v0 = vmov 0.0   ;;  %vm213_vm0 = vmmov 0   ;;  %s270_s1 = inlined_call_operand.vmem [shape: bf16[128,128], index: 1, kind: input, shape index: {}]   ;;  %s271_s0 = inlined_call_operand.vmem [shape: bf16[16,128], index: 0, kind: input, shape index: {}]   ;;  %s272_s2 = inlined_call_operand.vmem [shape: f32[1,128], index: 2, kind: input, shape index: {}]   ;;  %s273_s3 = inlined_call_operand.vmem [shape: f32[16,128], index: 3, kind: output, shape index: {}]  }
   0x1   :  { %181 = vmatprep.subr.bf16.mxu0 %v212_v0  ;;  %v203_v1 = vld [vmem:[%s270_s1] sm:$0xff]   ;;  %197 = vmatprep.mubr.msk.bf16.mxu0 %vm213_vm0, %v212_v0  ;;  %v204_v2 = vld [vmem:[%s270_s1 + $0x8] sm:$0xff]   ;;  %v205_v3 = vld [vmem:[%s270_s1 + $0x10] sm:$0xff]  }
   0x2   :  { %182 = vmatpush3.bf16.msra.mxu0 %v203_v1  ;;  %v206_v4 = vld [vmem:[%s270_s1 + $0x18] sm:$0xff]   ;;  %v207_v5 = vld [vmem:[%s270_s1 + $0x20] sm:$0xff]   ;;  %v208_v6 = vld [vmem:[%s270_s1 + $0x28] sm:$0xff]  }
   0x3   :  { %183 = vmatprep.subr.bf16.mxu0 %v212_v0  ;;  %v209_v7 = vld [vmem:[%s270_s1 + $0x30] sm:$0xff]   ;;  %v210_v8 = vld [vmem:[%s270_s1 + $0x38] sm:$0xff]   ;;  %v211_v9 = vld [vmem:[%s271_s0] sm:$0xff]  }
   0x4   :  { %v171_v10 = vld [vmem:[%s272_s2] ss:$0 sm:$0xff] }
   0x6   :  { %184 = vmatpush3.bf16.msra.mxu0 %v204_v2 }
   0x7   :  { %185 = vmatprep.subr.bf16.mxu0 %v212_v0 }
   0xa   :  { %186 = vmatpush3.bf16.msra.mxu0 %v205_v3 }
   0xb   :  { %187 = vmatprep.subr.bf16.mxu0 %v212_v0 }
   0xe   :  { %188 = vmatpush3.bf16.msra.mxu0 %v206_v4 }
   0xf   :  { %189 = vmatprep.subr.bf16.mxu0 %v212_v0 }
  0x12   :  { %190 = vmatpush3.bf16.msra.mxu0 %v207_v5 }
  0x13   :  { %191 = vmatprep.subr.bf16.mxu0 %v212_v0 }
  0x16   :  { %192 = vmatpush3.bf16.msra.mxu0 %v208_v6 }
  0x17   :  { %193 = vmatprep.subr.bf16.mxu0 %v212_v0 }
  0x1a   :  { %194 = vmatpush3.bf16.msra.mxu0 %v209_v7 }
  0x1b   :  { %195 = vmatprep.subr.bf16.mxu0 %v212_v0 }
  0x1e   :  { %196 = vmatpush3.bf16.msra.mxu0 %v210_v8 }
  0x21   :  { %198 = vmatmul.mubr.bf16.vlgmr.msra.gmra.mrb[0].mxu0 %v211_v9 }
  0xf4   :  { %v129_v11 = vpop.f32.mrb[0].mxu0 }
  0xf5   :  { %v152_v12 = vadd.f32 %v171_v10, %v129_v11  ;;  %v199_v13 = vpop.f32.mrb[1].mxu0 }
  0xf6   :  { %v132_v14 = vpop.f32.mrb[2].mxu0 }
  0xf7   :  { %v154_v15 = vmax.f32 %v152_v12, 0.0  ;;  %v153_v16 = vadd.f32 %v171_v10, %v132_v14  ;;  %v200_v17 = vpop.f32.mrb[3].mxu0 }
  0xf9   :  { %156 = vst [vmem:[%s273_s3] sm:$0xff] %v154_v15  ;;  %v155_v18 = vmax.f32 %v153_v16, 0.0 }
  0xfb   :  { %157 = vst [vmem:[%s273_s3 + $0x8] sm:$0xff] %v155_v18 }

// kernel: gated_gcn_net_forward.15
= control target key start
LH: loop header
LB: loop body
LE: loop exit
PB: predicated region body
PF: predicated region fallthrough
CT: control target
= control target key end

     0   :  { %s410_s1 = inlined_call_operand.vmem [shape: bf16[128,128], index: 1, kind: input, shape index: {}]   ;;  %s411_s0 = inlined_call_operand.vmem [shape: bf16[64,128], index: 0, kind: input, shape index: {}]   ;;  %s412_s2 = inlined_call_operand.vmem [shape: f32[1,128], index: 2, kind: input, shape index: {}]   ;;  %s413_s3 = inlined_call_operand.vmem [shape: f32[64,128], index: 3, kind: output, shape index: {}]  }
   0x1   :  { %v315_v0 = vld [vmem:[%s410_s1] sm:$0xff]   ;;  %v316_v1 = vld [vmem:[%s410_s1 + $0x8] sm:$0xff]   ;;  %v317_v2 = vld [vmem:[%s410_s1 + $0x10] sm:$0xff]  }
   0x2   :  { %275 = vmatprep.subr.bf16.mxu0 %v315_v0  ;;  %299 = vmatprep.subr.bf16.mxu1 %v315_v0  ;;  %v318_v3 = vld [vmem:[%s410_s1 + $0x18] sm:$0xff]   ;;  %v323_v4 = vld [vmem:[%s411_s0] sm:$0xff]   ;;  %v324_v5 = vld [vmem:[%s411_s0 + $0x10] sm:$0xff]  }
   0x3   :  { %276 = vmatpush3.bf16.msra.mxu0 %v315_v0  ;;  %307 = vmatpush3.bf16.msra.mxu1 %v315_v0  ;;  %v319_v6 = vld [vmem:[%s410_s1 + $0x20] sm:$0xff]   ;;  %v320_v7 = vld [vmem:[%s410_s1 + $0x28] sm:$0xff]   ;;  %v321_v8 = vld [vmem:[%s410_s1 + $0x30] sm:$0xff]  }
   0x4   :  { %277 = vmatprep.subr.bf16.mxu0 %v316_v1  ;;  %300 = vmatprep.subr.bf16.mxu1 %v316_v1  ;;  %v322_v9 = vld [vmem:[%s410_s1 + $0x38] sm:$0xff]   ;;  %v325_v10 = vld [vmem:[%s411_s0 + $0x8] sm:$0xff]   ;;  %v262_v12 = vld [vmem:[%s412_s2] ss:$0 sm:$0xff] }
   0x5   :  { %291 = vmatprep.mubr.bf16.mxu0 %v323_v4  ;;  %295 = vmatprep.mubr.bf16.mxu1 %v324_v5  ;;  %v326_v11 = vld [vmem:[%s411_s0 + $0x18] sm:$0xff]  }
   0x7   :  { %278 = vmatpush3.bf16.msra.mxu0 %v316_v1  ;;  %308 = vmatpush3.bf16.msra.mxu1 %v316_v1 }
   0x8   :  { %279 = vmatprep.subr.bf16.mxu0 %v317_v2  ;;  %301 = vmatprep.subr.bf16.mxu1 %v317_v2 }
   0xb   :  { %280 = vmatpush3.bf16.msra.mxu0 %v317_v2  ;;  %309 = vmatpush3.bf16.msra.mxu1 %v317_v2 }
   0xc   :  { %281 = vmatprep.subr.bf16.mxu0 %v318_v3  ;;  %302 = vmatprep.subr.bf16.mxu1 %v318_v3 }
   0xf   :  { %282 = vmatpush3.bf16.msra.mxu0 %v318_v3  ;;  %310 = vmatpush3.bf16.msra.mxu1 %v318_v3 }
  0x10   :  { %283 = vmatprep.subr.bf16.mxu0 %v319_v6  ;;  %303 = vmatprep.subr.bf16.mxu1 %v319_v6 }
  0x13   :  { %284 = vmatpush3.bf16.msra.mxu0 %v319_v6  ;;  %311 = vmatpush3.bf16.msra.mxu1 %v319_v6 }
  0x14   :  { %285 = vmatprep.subr.bf16.mxu0 %v320_v7  ;;  %304 = vmatprep.subr.bf16.mxu1 %v320_v7 }
  0x17   :  { %286 = vmatpush3.bf16.msra.mxu0 %v320_v7  ;;  %312 = vmatpush3.bf16.msra.mxu1 %v320_v7 }
  0x18   :  { %287 = vmatprep.subr.bf16.mxu0 %v321_v8  ;;  %305 = vmatprep.subr.bf16.mxu1 %v321_v8 }
  0x1b   :  { %288 = vmatpush3.bf16.msra.mxu0 %v321_v8  ;;  %313 = vmatpush3.bf16.msra.mxu1 %v321_v8 }
  0x1c   :  { %289 = vmatprep.subr.bf16.mxu0 %v322_v9  ;;  %306 = vmatprep.subr.bf16.mxu1 %v322_v9 }
  0x1f   :  { %290 = vmatpush3.bf16.msra.mxu0 %v322_v9  ;;  %314 = vmatpush3.bf16.msra.mxu1 %v322_v9 }
  0x22   :  { %292 = vmatmul.mubr.bf16.vlgmr.msra.gmra.mrb[0].mxu0 %v325_v10  ;;  %296 = vmatmul.mubr.bf16.vlgmr.msra.gmra.mrb[0].mxu1 %v326_v11 }
  0xf5   :  { %v293_v13 = vpop.f32.mrb[0].mxu0  ;;  %v297_v14 = vpop.f32.mrb[0].mxu1 }
  0xf6   :  { %v232_v15 = vadd.f32 %v293_v13, %v262_v12  ;;  %v236_v16 = vadd.f32 %v297_v14, %v262_v12  ;;  %v165_v17 = vpop.f32.mrb[1].mxu0  ;;  %v181_v18 = vpop.f32.mrb[1].mxu1 }
  0xf7   :  { %v230_v19 = vadd.f32 %v262_v12, %v165_v17  ;;  %v234_v20 = vadd.f32 %v262_v12, %v181_v18  ;;  %v294_v21 = vpop.f32.mrb[2].mxu0  ;;  %v298_v22 = vpop.f32.mrb[2].mxu1 }
  0xf8   :  { %240 = vst [vmem:[%s413_s3 + $0x10] sm:$0xff] %v232_v15  ;;  %244 = vst [vmem:[%s413_s3 + $0x30] sm:$0xff] %v236_v16  ;;  %v233_v23 = vadd.f32 %v294_v21, %v262_v12  ;;  %v237_v24 = vadd.f32 %v298_v22, %v262_v12  ;;  %v168_v25 = vpop.f32.mrb[3].mxu0  ;;  %v184_v26 = vpop.f32.mrb[3].mxu1 }
  0xf9   :  { %238 = vst [vmem:[%s413_s3] sm:$0xff] %v230_v19  ;;  %242 = vst [vmem:[%s413_s3 + $0x20] sm:$0xff] %v234_v20  ;;  %v231_v27 = vadd.f32 %v262_v12, %v168_v25  ;;  %v235_v28 = vadd.f32 %v262_v12, %v184_v26 }
  0xfa   :  { %241 = vst [vmem:[%s413_s3 + $0x18] sm:$0xff] %v233_v23  ;;  %245 = vst [vmem:[%s413_s3 + $0x38] sm:$0xff] %v237_v24 }
  0xfb   :  { %239 = vst [vmem:[%s413_s3 + $0x8] sm:$0xff] %v231_v27  ;;  %243 = vst [vmem:[%s413_s3 + $0x28] sm:$0xff] %v235_v28 }

// kernel: gated_gcn_net_forward.18
= control target key start
LH: loop header
LB: loop body
LE: loop exit
PB: predicated region body
PF: predicated region fallthrough
CT: control target
= control target key end

     0   :  { %s820_s0 = inlined_call_operand.vmem [shape: s32[64], index: 0, kind: input, shape index: {}]   ;;  %s821_s2 = inlined_call_operand.vmem [shape: f32[32,1,16], index: 2, kind: input, shape index: {}, may-alias: {2,3}]   ;;  %s822_s3 = inlined_call_operand.vmem [shape: f32[32,1,16], index: 3, kind: input, shape index: {}, may-alias: {2,3}]   ;;  %s823_s4 = inlined_call_operand.vmem [shape: f32[64,1,32], index: 4, kind: input, shape index: {}]   ;;  %s824_s5 = inlined_call_operand.vmem [shape: f32[64,1,32], index: 5, kind: input, shape index: {}]   ;;  %s825_s6 = inlined_call_operand.vmem [shape: f32[16,32], index: 6, kind: input, shape index: {}]   ;;  %s826_s7 = inlined_call_operand.vmem [shape: f32[16,32], index: 7, kind: input, shape index: {}]   ;;  %s827_s8 = inlined_call_operand.vmem [shape: f32[5,32], index: 8, kind: input, shape index: {}]   ;;  %s828_s9 = inlined_call_operand.vmem [shape: f32[64,1,32], index: 9, kind: output, shape index: {}]   ;;  %s829_s1 = inlined_call_operand.vmem [shape: s32[64], index: 1, kind: input, shape index: {}]  }
   0x1   :  { %s14_s11 = sshll.u32 %s820_s0, 4  ;;  %s18_s14 = sshll.u32 %s829_s1, 4  ;;  %s15_s11 = int_to_ptr.vmem [resolvable:$true] %s14_s11  ;;  %s19_s14 = int_to_ptr.vmem [resolvable:$true] %s18_s14 }
   0x2   :  { %s672_s15 = scalar_lea.vmem %s15_s11, 16  ;;  %p677_p1 = scmp.lt.s32.totalorder %s15_s11, %s15_s11 }
   0x3   :  { %p673_p0 = scmp.ne.s32.totalorder %s15_s11, %s672_s15  ;;  %p678_p2 = scmp.lt.s32.totalorder %s672_s15, %s672_s15 }
   0x5   :  { %p679_p3 = por %p678_p2, %p677_p1 }
   0x7   :  { %p680_p4 = pnand %p679_p3, %p673_p0 }
   0x9   :  { %683 = shalt.err (!%p680_p4)  }
   0xa   :  { %s706_s16 = smov [#allocation3]   ;;  %s684_s17 = scalar_lea.vmem %s19_s14, 16 }
   0xb   :  { %17 = dma.vmem_to_smem %s15_s11, 16, %s706_s16, [#allocation2] }
   0xc   :  { %p685_p5 = scmp.ne.s32.totalorder %s19_s14, %s684_s17  ;;  %p689_p6 = scmp.lt.s32.totalorder %s19_s14, %s19_s14 }
   0xd   :  { %p690_p7 = scmp.lt.s32.totalorder %s684_s17, %s684_s17 }
   0xf   :  { %p691_p8 = por %p690_p7, %p689_p6 }
  0x11   :  { %p692_p9 = pnand %p691_p8, %p685_p5 }
  0x13   :  { %695 = shalt.err (!%p692_p9)  }
  0x14   :  { %s707_s0 = smov [#allocation4]  }
  0x15   :  { %21 = dma.vmem_to_smem %s19_s14, 16, %s707_s0, [#allocation2] }
  0x16   :  { %700 = dma.done.wait [#allocation2], 32 }
  0x17   :  { %701 = vsyncadd [#allocation2], 4294967264 }
  0x18   :  { %23 = sfence }
  0x19   :  { %s768_s1 = smov 0  }
  0x1a LB: > { %s774_s18 = sadd.s32 4294967295, %s704_s1   ;;  %p625_p10 = scmp.ge.s32.totalorder %s704_s1, 1  ;;  %s704_s1 = sphi %s768_s1, %s29_s1  }
  0x1b   : > { %p279_p11 = scmp.lt.s32.totalorder %s704_s1, 65 }
  0x1d   : > { %p280_p12 = pnand %p625_p10, %p279_p11 }
  0x1e   : > { %v342_v0 = vld [vmem:[%s826_s7] sm:$0xff] (!%p280_p12)  ;;  %v343_v1 = vld [vmem:[%s826_s7 + $0x8] sm:$0xff] (!%p280_p12)  ;;  %v708_v3 = vmov (!%p280_p12), 0.0|0.0   ;;  %s323_s27 = sld [smem:[#allocation4 + %s774_s18]] (!%p280_p12)  ;;  %vm709_vm0 = vmmov (!%p280_p12), 0   ;;  %v710_v7 = vmov (!%p280_p12), 0.0   ;;  %v500_v13 = vlaneseq (!%p280_p12) }
  0x1f   : > { %283 = sbr.rel (%p280_p12) target bundleno = 271 (0x10f), region = 48  ;;  %v340_v2 = vld [vmem:[%s825_s6] sm:$0xff] (!%p280_p12)  ;;  %650 = vmatprep.subr.bf16.mxu0 (!%p280_p12), %v708_v3  ;;  %653 = vmatprep.subr.bf16.mxu1 (!%p280_p12), %v708_v3  ;;  %v651_v4 = vpack.c.bf16 (!%p280_p12), %v343_v1, %v342_v0  ;;  %v341_v5 = vld [vmem:[%s825_s6 + $0x8] sm:$0xff] (!%p280_p12)  ;;  %s318_s28 = sld [smem:[#allocation3 + %s774_s18]] (!%p280_p12)  ;;  %vm344_vm1 = vcmask (!%p280_p12), 130048   ;;  %vm548_vm2 = vcmask (!%p280_p12), 253952  }
  0x20   : > { %v654_v6 = vpack.c.bf16 (!%p280_p12), %v341_v5, %v340_v2  ;;  %640 = vmatprep.mubr.msk.f32.mxu0 (!%p280_p12), %vm709_vm0, %v710_v7  ;;  %647 = vmatprep.mubr.msk.f32.mxu1 (!%p280_p12), %vm709_vm0, %v710_v7  ;;  %v339_v10 = vld [vmem:[%s827_s8] sm:$0x1f] (!%p280_p12)  ;;  %v711_v11 = vmov (!%p280_p12), 1966171168   ;;  %v501_v16 = vshrl.u32 (!%p280_p12), %v500_v13, 7  ;;  %p328_p1 = scmp.lt.s32.totalorder (!%p280_p12), %s774_s18, 63 }
  0x21   : > { %652 = vmatpush3.bf16.msra.mxu0 (!%p280_p12), %v651_v4  ;;  %v498_v12 = vunpack.c.l.s4 (!%p280_p12), %v711_v11  ;;  %v522_v14 = vadd.f32 (!%p280_p12), 1e-05, %v339_v10 }
  0x22   : > { %655 = vmatpush3.bf16.msra.mxu1 (!%p280_p12), %v654_v6 }
  0x23   : > { %v499_v15 = vunpack.c.0.s8 (!%p280_p12), %v498_v12  ;;  %670 = vrsqrt.f32 (!%p280_p12), %v522_v14 }
  0x24   : > { %p324_p13 = scmp.lt.s32.totalorder (!%p280_p12), %s323_s27, 31 }
  0x25   : > { %p319_p0 = scmp.lt.s32.totalorder (!%p280_p12), %s318_s28, 31  ;;  %v502_v17 = vsub.s32 (!%p280_p12), %v499_v15, %v501_v16 }
  0x26   : > { %s831_s27 = smov (!%p324_p13, %s323_s27), 31  ;;  %s835_s18 = smov (!%p328_p1, %s774_s18), 63 }
  0x27   : > { %s833_s28 = smov (!%p319_p0, %s318_s28), 31  ;;  %s326_s10 = scalar_lea.vmem %s822_s3, %s831_s27  ;;  %v503_v18 = vrot.slane %v339_v10, %v502_v17 }
  0x28   : > { %v338_v8 = vld [vmem:[%s326_s10] sm:$0x1]  ;;  %s321_s13 = scalar_lea.vmem %s821_s2, %s833_s28  ;;  %s330_s0 = scalar_lea.vmem %s823_s4, %s835_s18 }
  0x29   : > { %641 = vmatmul.mubr.msk.f32.vlgmr.msra.gmra.mrb[0].mxu0 %vm344_vm1, %v338_v8  ;;  %v337_v9 = vld [vmem:[%s321_s13] sm:$0x1]  ;;  %s333_s21 = scalar_lea.vmem %s824_s5, %s835_s18  ;;  %v504_v20 = vcombine.high %v503_v18, %v503_v18  ;;  %v511_v35 = vrot.slane %v503_v18, %v502_v17  ;;  %s336_s24 = scalar_lea.vmem %s828_s9, %s835_s18 }
  0x2a   : > { %648 = vmatmul.mubr.msk.f32.vlgmr.msra.gmra.mrb[0].mxu1 %vm344_vm1, %v337_v9  ;;  %v492_v22 = vld [vmem:[%s330_s0] sm:$0x1] }
  0x2b   : > { %v493_v23 = vld [vmem:[%s333_s21] sm:$0x1]  ;;  %v518_v25 = vrot.slane %v504_v20, %v502_v17  ;;  %v544_v39 = vcombine.high %v511_v35, %v511_v35 }
  0x2c   : > { %v494_v29 = vadd.f32 %v493_v23, %v492_v22 }
  0x2d   : > { %v671_v19 = vpop.eup %670  ;;  %v519_v33 = vcombine.high %v518_v25, %v518_v25 }
  0x2e   : > { %v525_v21 = vcombine.high %v671_v19, %v671_v19 }
  0x30   : > { %v532_v30 = vrot.slane %v525_v21, %v502_v17 }
  0x32   : > { %v539_v36 = vrot.slane %v532_v30, %v502_v17 }
  0xfc   : > { %v414_v24 = vpop.f32.mrb[0].mxu0 }
  0xfd   : > { %v487_v26 = vpop.f32.mrb[0].mxu1  ;;  %v642_v27 = vpop.f32.mrb[1].mxu0 }
  0xfe   : > { %v488_v28 = vadd.f32 %v487_v26, %v414_v24  ;;  %v649_v31 = vpop.f32.mrb[1].mxu1 }
 0x100   : > { %v491_v32 = vadd.f32 %v488_v28, %v339_v10 }
 0x102   : > { %v495_v34 = vadd.f32 %v494_v29, %v491_v32 }
 0x104   : > { %v521_v37 = vsub.f32 %v495_v34, %v519_v33 }
 0x106   : > { %v541_v38 = vmul.f32 %v539_v36, %v521_v37 }
 0x108   : > { %v543_v40 = vmul.f32 %v541_v38, %v518_v25 }
 0x10a   : > { %v546_v41 = vadd.f32 %v544_v39, %v543_v40 }
 0x10c   : > { %v547_v42 = vmax.f32 %v546_v41, 0.0 }
 0x10e   : > { %549 = vst.msk [vmem:[%s336_s24] sm:$0x1] %vm548_vm2, %v547_v42 }
 0x10f PF: > { %s29_s1 = sadd.s32 1, %s704_s1  }
 0x110   : > { %p26_p2 = scmp.ge.s32.totalorder %s29_s1, 66  }
 0x112   :  { %28 = sbr.rel (!%p26_p2) target bundleno = 26 (0x1a), region = 87 }

// kernel: gated_gcn_net_forward.19
= control target key start
LH: loop header
LB: loop body
LE: loop exit
PB: predicated region body
PF: predicated region fallthrough
CT: control target
= control target key end

     0   :  { %s306_s1 = inlined_call_operand.vmem [shape: bf16[128,128], index: 1, kind: input, shape index: {}]   ;;  %s307_s0 = inlined_call_operand.vmem [shape: bf16[32,128], index: 0, kind: input, shape index: {}]   ;;  %s308_s2 = inlined_call_operand.vmem [shape: f32[1,128], index: 2, kind: input, shape index: {}]   ;;  %s309_s3 = inlined_call_operand.vmem [shape: f32[32,128], index: 3, kind: output, shape index: {}]  }
   0x1   :  { %v231_v0 = vld [vmem:[%s306_s1] sm:$0xff]   ;;  %v232_v1 = vld [vmem:[%s306_s1 + $0x8] sm:$0xff]   ;;  %v233_v2 = vld [vmem:[%s306_s1 + $0x10] sm:$0xff]  }
   0x2   :  { %211 = vmatprep.subr.bf16.mxu0 %v231_v0  ;;  %v234_v3 = vld [vmem:[%s306_s1 + $0x18] sm:$0xff]   ;;  %v239_v4 = vld [vmem:[%s307_s0] sm:$0xff]   ;;  %v236_v6 = vld [vmem:[%s306_s1 + $0x28] sm:$0xff]  }
   0x3   :  { %212 = vmatpush3.bf16.msra.mxu0 %v231_v0  ;;  %227 = vmatprep.mubr.bf16.mxu0 %v239_v4  ;;  %v235_v5 = vld [vmem:[%s306_s1 + $0x20] sm:$0xff]   ;;  %v237_v7 = vld [vmem:[%s306_s1 + $0x30] sm:$0xff]   ;;  %v238_v8 = vld [vmem:[%s306_s1 + $0x38] sm:$0xff]  }
   0x4   :  { %213 = vmatprep.subr.bf16.mxu0 %v232_v1  ;;  %v240_v9 = vld [vmem:[%s307_s0 + $0x8] sm:$0xff]   ;;  %v200_v10 = vld [vmem:[%s308_s2] ss:$0 sm:$0xff] }
   0x7   :  { %214 = vmatpush3.bf16.msra.mxu0 %v232_v1 }
   0x8   :  { %215 = vmatprep.subr.bf16.mxu0 %v233_v2 }
   0xb   :  { %216 = vmatpush3.bf16.msra.mxu0 %v233_v2 }
   0xc   :  { %217 = vmatprep.subr.bf16.mxu0 %v234_v3 }
   0xf   :  { %218 = vmatpush3.bf16.msra.mxu0 %v234_v3 }
  0x10   :  { %219 = vmatprep.subr.bf16.mxu0 %v235_v5 }
  0x13   :  { %220 = vmatpush3.bf16.msra.mxu0 %v235_v5 }
  0x14   :  { %221 = vmatprep.subr.bf16.mxu0 %v236_v6 }
  0x17   :  { %222 = vmatpush3.bf16.msra.mxu0 %v236_v6 }
  0x18   :  { %223 = vmatprep.subr.bf16.mxu0 %v237_v7 }
  0x1b   :  { %224 = vmatpush3.bf16.msra.mxu0 %v237_v7 }
  0x1c   :  { %225 = vmatprep.subr.bf16.mxu0 %v238_v8 }
  0x1f   :  { %226 = vmatpush3.bf16.msra.mxu0 %v238_v8 }
  0x22   :  { %228 = vmatmul.mubr.bf16.vlgmr.msra.gmra.mrb[0].mxu0 %v240_v9 }
  0xf5   :  { %v229_v11 = vpop.f32.mrb[0].mxu0 }
  0xf6   :  { %v180_v12 = vadd.f32 %v229_v11, %v200_v10  ;;  %v141_v13 = vpop.f32.mrb[1].mxu0 }
  0xf7   :  { %v178_v14 = vadd.f32 %v200_v10, %v141_v13  ;;  %v230_v15 = vpop.f32.mrb[2].mxu0 }
  0xf8   :  { %184 = vst [vmem:[%s309_s3 + $0x10] sm:$0xff] %v180_v12  ;;  %v181_v16 = vadd.f32 %v230_v15, %v200_v10  ;;  %v144_v17 = vpop.f32.mrb[3].mxu0 }
  0xf9   :  { %182 = vst [vmem:[%s309_s3] sm:$0xff] %v178_v14  ;;  %v179_v18 = vadd.f32 %v200_v10, %v144_v17 }
  0xfa   :  { %185 = vst [vmem:[%s309_s3 + $0x18] sm:$0xff] %v181_v16 }
  0xfb   :  { %183 = vst [vmem:[%s309_s3 + $0x8] sm:$0xff] %v179_v18 }

// kernel: gated_gcn_net_forward.23
= control target key start
LH: loop header
LB: loop body
LE: loop exit
PB: predicated region body
PF: predicated region fallthrough
CT: control target
= control target key end

     0   :  { %v49_v3 = vlaneseq  ;;  %vm95_vm0 = vcmask 261120   ;;  %s211_s2 = inlined_call_operand.vmem [shape: f32[32,32], index: 2, kind: input, shape index: {}]   ;;  %s212_s4 = inlined_call_operand.vmem [shape: f32[4,32], index: 4, kind: input, shape index: {}]   ;;  %s213_s1 = inlined_call_operand.vmem [shape: f32[32,32], index: 1, kind: input, shape index: {}]   ;;  %s214_s0 = inlined_call_operand.vmem [shape: f32[32,32], index: 0, kind: input, shape index: {}]   ;;  %s215_s3 = inlined_call_operand.vmem [shape: f32[32,32], index: 3, kind: input, shape index: {}]   ;;  %s216_s5 = inlined_call_operand.vmem [shape: f32[32,32], index: 5, kind: output, shape index: {}]  }
   0x1   :  { %v28_v0 = vld [vmem:[%s211_s2] sm:$0xff]  ;;  %v29_v5 = vld [vmem:[%s211_s2 + $0x8] sm:$0xff]  ;;  %v30_v7 = vld [vmem:[%s211_s2 + $0x10] sm:$0xff] }
   0x2   :  { %v32_v1 = vadd.f32 1e-06, %v28_v0  ;;  %v48_v2 = vld [vmem:[%s212_s4] sm:$0xf]  ;;  %v33_v6 = vadd.f32 1e-06, %v29_v5 }
   0x3   :  { %v57_v4 = vadd.f32 1e-05, %v48_v2  ;;  %v34_v8 = vadd.f32 1e-06, %v30_v7  ;;  %v31_v9 = vld [vmem:[%s211_s2 + $0x18] sm:$0xff]  ;;  %v50_v10 = vshrl.u32 %v49_v3, 7 }
   0x4   :  { %104 = vrcp.f32 %v32_v1  ;;  %v35_v11 = vadd.f32 1e-06, %v31_v9  ;;  %v24_v13 = vld [vmem:[%s213_s1] sm:$0xff]  ;;  %v25_v21 = vld [vmem:[%s213_s1 + $0x8] sm:$0xff]  ;;  %v26_v22 = vld [vmem:[%s213_s1 + $0x10] sm:$0xff] }
   0x5   :  { %106 = vrsqrt.f32 %v57_v4  ;;  %v51_v12 = vsub.s32 2, %v50_v10  ;;  %v61_v14 = vsub.s32 3, %v50_v10  ;;  %v20_v16 = vld [vmem:[%s214_s0] sm:$0xff]  ;;  %v69_v20 = vsub.s32 0, %v50_v10  ;;  %v21_v27 = vld [vmem:[%s214_s0 + $0x8] sm:$0xff]  ;;  %v27_v28 = vld [vmem:[%s213_s1 + $0x18] sm:$0xff] }
   0x6   :  { %108 = vrcp.f32 %v33_v6  ;;  %v77_v26 = vsub.s32 1, %v50_v10  ;;  %v22_v31 = vld [vmem:[%s214_s0 + $0x10] sm:$0xff]  ;;  %v23_v36 = vld [vmem:[%s214_s0 + $0x18] sm:$0xff]  ;;  %v87_v50 = vld [vmem:[%s215_s3] sm:$0xff] }
   0x7   :  { %110 = vrcp.f32 %v34_v8  ;;  %v52_v19 = vrot.slane %v48_v2, %v51_v12  ;;  %v70_v34 = vrot.slane %v48_v2, %v69_v20  ;;  %v88_v58 = vld [vmem:[%s215_s3 + $0x8] sm:$0xff]  ;;  %v89_v61 = vld [vmem:[%s215_s3 + $0x10] sm:$0xff]  ;;  %v90_v0 = vld [vmem:[%s215_s3 + $0x18] sm:$0xff] }
   0x8   :  { %112 = vrcp.f32 %v35_v11  ;;  %v78_v40 = vrot.slane %v48_v2, %v77_v26 }
   0xe   :  { %v105_v15 = vpop.eup %104 }
   0xf   :  { %v107_v17 = vpop.eup %106  ;;  %v37_v18 = vmul.f32 %v105_v15, %v24_v13 }
  0x10   :  { %v109_v23 = vpop.eup %108  ;;  %v62_v25 = vrot.slane %v107_v17, %v61_v14 }
  0x11   :  { %v44_v24 = vadd.f32 %v37_v18, %v20_v16  ;;  %v111_v29 = vpop.eup %110  ;;  %v39_v30 = vmul.f32 %v109_v23, %v25_v21 }
  0x12   :  { %v113_v32 = vpop.eup %112  ;;  %v41_v35 = vmul.f32 %v111_v29, %v26_v22 }
  0x13   :  { %v53_v33 = vsub.f32 %v44_v24, %v52_v19  ;;  %v45_v37 = vadd.f32 %v39_v30, %v21_v27  ;;  %v43_v38 = vmul.f32 %v113_v32, %v27_v28 }
  0x14   :  { %v46_v41 = vadd.f32 %v41_v35, %v22_v31 }
  0x15   :  { %v63_v39 = vmul.f32 %v62_v25, %v53_v33  ;;  %v54_v42 = vsub.f32 %v45_v37, %v52_v19  ;;  %v47_v43 = vadd.f32 %v43_v38, %v23_v36 }
  0x16   :  { %v55_v45 = vsub.f32 %v46_v41, %v52_v19 }
  0x17   :  { %v71_v44 = vmul.f32 %v70_v34, %v63_v39  ;;  %v64_v46 = vmul.f32 %v62_v25, %v54_v42  ;;  %v56_v47 = vsub.f32 %v47_v43, %v52_v19 }
  0x18   :  { %v65_v49 = vmul.f32 %v62_v25, %v55_v45 }
  0x19   :  { %v79_v48 = vadd.f32 %v78_v40, %v71_v44  ;;  %v72_v51 = vmul.f32 %v70_v34, %v64_v46  ;;  %v66_v52 = vmul.f32 %v62_v25, %v56_v47 }
  0x1a   :  { %v73_v54 = vmul.f32 %v70_v34, %v65_v49 }
  0x1b   :  { %v83_v53 = vmax.f32 %v79_v48, 0.0  ;;  %v80_v55 = vadd.f32 %v78_v40, %v72_v51  ;;  %v74_v56 = vmul.f32 %v70_v34, %v66_v52 }
  0x1c   :  { %v81_v59 = vadd.f32 %v78_v40, %v73_v54 }
  0x1d   :  { %v91_v57 = vadd.f32 %v87_v50, %v83_v53  ;;  %v84_v60 = vmax.f32 %v80_v55, 0.0  ;;  %v82_v62 = vadd.f32 %v78_v40, %v74_v56 }
  0x1e   :  { %v85_v63 = vmax.f32 %v81_v59, 0.0 }
  0x1f   :  { %96 = vst.msk [vmem:[%s216_s5] sm:$0xff] %vm95_vm0, %v91_v57  ;;  %v92_v1 = vadd.f32 %v88_v58, %v84_v60  ;;  %v86_v2 = vmax.f32 %v82_v62, 0.0 }
  0x20   :  { %v93_v3 = vadd.f32 %v89_v61, %v85_v63 }
  0x21   :  { %97 = vst.msk [vmem:[%s216_s5 + $0x8] sm:$0xff] %vm95_vm0, %v92_v1  ;;  %v94_v4 = vadd.f32 %v90_v0, %v86_v2 }
  0x22   :  { %98 = vst.msk [vmem:[%s216_s5 + $0x10] sm:$0xff] %vm95_vm0, %v93_v3 }
  0x23   :  { %99 = vst.msk [vmem:[%s216_s5 + $0x18] sm:$0xff] %vm95_vm0, %v94_v4 }

// kernel: gated_gcn_net_forward.27
= control target key start
LH: loop header
LB: loop body
LE: loop exit
PB: predicated region body
PF: predicated region fallthrough
CT: control target
= control target key end

     0   :  { %v50_v3 = vlaneseq  ;;  %s254_s0 = inlined_call_operand.vmem [shape: f32[32,32], index: 0, kind: input, shape index: {}]   ;;  %s255_s1 = inlined_call_operand.vmem [shape: f32[32,32], index: 1, kind: input, shape index: {}]   ;;  %s256_s2 = inlined_call_operand.vmem [shape: f32[32,32], index: 2, kind: input, shape index: {}]   ;;  %s257_s3 = inlined_call_operand.vmem [shape: f32[32,32], index: 3, kind: input, shape index: {}]   ;;  %s258_s4 = inlined_call_operand.vmem [shape: f32[4,32], index: 4, kind: input, shape index: {}]   ;;  %s259_s5 = inlined_call_operand.hbm [shape: f32[32,32], index: 5, kind: output, shape index: {}]  }
   0x1   :  { %v29_v0 = vld [vmem:[%s256_s2] sm:$0xff]  ;;  %v30_v5 = vld [vmem:[%s256_s2 + $0x8] sm:$0xff]  ;;  %v31_v7 = vld [vmem:[%s256_s2 + $0x10] sm:$0xff] }
   0x2   :  { %v33_v1 = vadd.f32 1e-06, %v29_v0  ;;  %v49_v2 = vld [vmem:[%s258_s4] sm:$0xf]  ;;  %v34_v6 = vadd.f32 1e-06, %v30_v5 }
   0x3   :  { %v58_v4 = vadd.f32 1e-05, %v49_v2  ;;  %v35_v8 = vadd.f32 1e-06, %v31_v7  ;;  %v32_v9 = vld [vmem:[%s256_s2 + $0x18] sm:$0xff]  ;;  %v51_v10 = vshrl.u32 %v50_v3, 7 }
   0x4   :  { %120 = vrcp.f32 %v33_v1  ;;  %v36_v11 = vadd.f32 1e-06, %v32_v9 }
   0x5   :  { %122 = vrsqrt.f32 %v58_v4 }
   0x6   :  { %124 = vrcp.f32 %v34_v6 }
   0x7   :  { %10 = vsyncpa [#allocation3], 0  ;;  %126 = vrcp.f32 %v35_v8  ;;  %v52_v12 = vsub.s32 2, %v51_v10  ;;  %v25_v13 = vld [vmem:[%s255_s1] sm:$0xff]  ;;  %v62_v14 = vsub.s32 3, %v51_v10  ;;  %v26_v17 = vld [vmem:[%s255_s1 + $0x8] sm:$0xff] }
   0x8   :  { %128 = vrcp.f32 %v36_v11  ;;  %v21_v16 = vld [vmem:[%s254_s0] sm:$0xff]  ;;  %v70_v21 = vsub.s32 0, %v51_v10  ;;  %v22_v23 = vld [vmem:[%s254_s0 + $0x8] sm:$0xff]  ;;  %v27_v24 = vld [vmem:[%s255_s1 + $0x10] sm:$0xff]  ;;  %v78_v27 = vsub.s32 1, %v51_v10  ;;  %vm96_vm0 = vcmask 261120  }
   0x9   :  { %v53_v20 = vrot.slane %v49_v2, %v52_v12  ;;  %v28_v29 = vld [vmem:[%s255_s1 + $0x18] sm:$0xff]  ;;  %v23_v31 = vld [vmem:[%s254_s0 + $0x10] sm:$0xff]  ;;  %v88_v51 = vld [vmem:[%s257_s3] sm:$0xff]  ;;  %s154_s23 = smov [#allocation2]  }
   0xa   :  { %v71_v34 = vrot.slane %v49_v2, %v70_v21  ;;  %v24_v37 = vld [vmem:[%s254_s0 + $0x18] sm:$0xff]  ;;  %v79_v40 = vrot.slane %v49_v2, %v78_v27  ;;  %v89_v56 = vld [vmem:[%s257_s3 + $0x8] sm:$0xff]  ;;  %v90_v61 = vld [vmem:[%s257_s3 + $0x10] sm:$0xff]  ;;  %s106_s24 = sshll.u32 %s154_s23, 4  ;;  %s107_s24 = int_to_ptr.vmem [resolvable:$true] %s106_s24 }
   0xb   :  { %v91_v1 = vld [vmem:[%s257_s3 + $0x18] sm:$0xff]  ;;  %s130_s25 = scalar_lea.vmem %s107_s24, 512  ;;  %p135_p1 = scmp.lt.s32.totalorder %s107_s24, %s107_s24 }
   0xc   :  { %p131_p0 = scmp.ne.s32.totalorder %s107_s24, %s130_s25  ;;  %p136_p2 = scmp.lt.s32.totalorder %s130_s25, %s130_s25 }
   0xe   :  { %v121_v15 = vpop.eup %120  ;;  %p137_p3 = por %p136_p2, %p135_p1 }
   0xf   :  { %v123_v18 = vpop.eup %122  ;;  %v38_v19 = vmul.f32 %v121_v15, %v25_v13 }
  0x10   :  { %v125_v22 = vpop.eup %124  ;;  %v63_v26 = vrot.slane %v123_v18, %v62_v14  ;;  %p138_p4 = pnand %p137_p3, %p131_p0 }
  0x11   :  { %v45_v25 = vadd.f32 %v38_v19, %v21_v16  ;;  %v40_v28 = vmul.f32 %v125_v22, %v26_v17  ;;  %v127_v30 = vpop.eup %126 }
  0x12   :  { %v129_v32 = vpop.eup %128  ;;  %v42_v36 = vmul.f32 %v127_v30, %v27_v24 }
  0x13   :  { %v54_v33 = vsub.f32 %v45_v25, %v53_v20  ;;  %v46_v35 = vadd.f32 %v40_v28, %v22_v23  ;;  %v44_v38 = vmul.f32 %v129_v32, %v28_v29 }
  0x14   :  { %v47_v42 = vadd.f32 %v42_v36, %v23_v31 }
  0x15   :  { %v64_v39 = vmul.f32 %v63_v26, %v54_v33  ;;  %v55_v41 = vsub.f32 %v46_v35, %v53_v20  ;;  %v48_v43 = vadd.f32 %v44_v38, %v24_v37 }
  0x16   :  { %v56_v46 = vsub.f32 %v47_v42, %v53_v20 }
  0x17   :  { %v72_v44 = vmul.f32 %v71_v34, %v64_v39  ;;  %v65_v45 = vmul.f32 %v63_v26, %v55_v41  ;;  %v57_v47 = vsub.f32 %v48_v43, %v53_v20 }
  0x18   :  { %v66_v50 = vmul.f32 %v63_v26, %v56_v46 }
  0x19   :  { %v80_v48 = vadd.f32 %v79_v40, %v72_v44  ;;  %v73_v49 = vmul.f32 %v71_v34, %v65_v45  ;;  %v67_v52 = vmul.f32 %v63_v26, %v57_v47 }
  0x1a   :  { %v74_v55 = vmul.f32 %v71_v34, %v66_v50 }
  0x1b   :  { %v84_v53 = vmax.f32 %v80_v48, 0.0  ;;  %v81_v54 = vadd.f32 %v79_v40, %v73_v49  ;;  %v75_v57 = vmul.f32 %v71_v34, %v67_v52 }
  0x1c   :  { %v82_v60 = vadd.f32 %v79_v40, %v74_v55 }
  0x1d   :  { %v92_v58 = vadd.f32 %v88_v51, %v84_v53  ;;  %v85_v59 = vmax.f32 %v81_v54, 0.0  ;;  %v83_v62 = vadd.f32 %v79_v40, %v75_v57 }
  0x1e   :  { %v86_v0 = vmax.f32 %v82_v60, 0.0 }
  0x1f   :  { %97 = vst.msk [vmem:[#allocation2] sm:$0xff] %vm96_vm0, %v92_v58  ;;  %v93_v63 = vadd.f32 %v89_v56, %v85_v59  ;;  %v87_v2 = vmax.f32 %v83_v62, 0.0 }
  0x20   :  { %v94_v3 = vadd.f32 %v90_v61, %v86_v0 }
  0x21   :  { %98 = vst.msk [vmem:[#allocation2 + $0x8] sm:$0xff] %vm96_vm0, %v93_v63  ;;  %v95_v4 = vadd.f32 %v91_v1, %v87_v2 }
  0x22   :  { %99 = vst.msk [vmem:[#allocation2 + $0x10] sm:$0xff] %vm96_vm0, %v94_v3 }
  0x23   :  { %100 = vst.msk [vmem:[#allocation2 + $0x18] sm:$0xff] %vm96_vm0, %v95_v4 }
  0x24   :  { %141 = shalt.err (!%p138_p4)
}
  0x25   :  { %s142_s27 = scalar_lea.hbm %s259_s5, 512 }
  0x26   :  { %p143_p5 = scmp.ne.s32.totalorder %s259_s5, %s142_s27  ;;  %p146_p6 = scmp.lt.u32.totalorder %s142_s27, %s259_s5 }
  0x28   :  { %p148_p7 = pnand %p146_p6, %p143_p5 }
  0x2a   :  { %151 = shalt.err (!%p148_p7)
}
  0x2b   :  { %s155_s6 = smov 128   ;;  %s156_s7 = smov 8  }
  0x2c   :  { %112 = dma.vmem_to_hbm [thread:$0]  %s107_s24, 512, %s259_s5, [#allocation3], %s155_s6, %s155_s6, %s156_s7  }
  0x2d   :  { %152 = dma.done.wait [#allocation3], 512  }
  0x2e   :  { %153 = vsyncadd [#allocation3], 4294966784 }
  0x2f   :  { %116 = vsyncpa [#allocation3], 1 }

// kernel: gated_gcn_net_forward.22
= control target key start
LH: loop header
LB: loop body
LE: loop exit
PB: predicated region body
PF: predicated region fallthrough
CT: control target
= control target key end

     0   :  { %s1133_s0 = inlined_call_operand.vmem [shape: s32[64], index: 0, kind: input, shape index: {}]   ;;  %s1134_s2 = inlined_call_operand.vmem [shape: f32[32,4,32], index: 2, kind: input, shape index: {}, may-alias: {2,3}]   ;;  %s1135_s3 = inlined_call_operand.vmem [shape: f32[32,4,32], index: 3, kind: input, shape index: {}, may-alias: {2,3}]   ;;  %s1136_s4 = inlined_call_operand.vmem [shape: f32[64,1,32], index: 4, kind: input, shape index: {}]   ;;  %s1137_s5 = inlined_call_operand.vmem [shape: f32[64,1,32], index: 5, kind: input, shape index: {}]   ;;  %s1138_s6 = inlined_call_operand.vmem [shape: f32[4,32], index: 6, kind: input, shape index: {}]   ;;  %s1139_s7 = inlined_call_operand.vmem [shape: f32[64,1,32], index: 7, kind: output, shape index: {0}]   ;;  %s1140_s8 = inlined_call_operand.vmem [shape: f32[32,1,32], index: 8, kind: output, shape index: {1}]   ;;  %s1141_s9 = inlined_call_operand.vmem [shape: f32[32,1,32], index: 9, kind: output, shape index: {2}]   ;;  %s1142_s1 = inlined_call_operand.vmem [shape: s32[64], index: 1, kind: input, shape index: {}]  }
   0x1   :  { %s15_s11 = sshll.u32 %s1133_s0, 4  ;;  %s19_s14 = sshll.u32 %s1142_s1, 4  ;;  %s16_s11 = int_to_ptr.vmem [resolvable:$true] %s15_s11  ;;  %s20_s14 = int_to_ptr.vmem [resolvable:$true] %s19_s14 }
   0x2   :  { %s650_s15 = scalar_lea.vmem %s16_s11, 16  ;;  %p655_p1 = scmp.lt.s32.totalorder %s16_s11, %s16_s11 }
   0x3   :  { %p651_p0 = scmp.ne.s32.totalorder %s16_s11, %s650_s15  ;;  %p656_p2 = scmp.lt.s32.totalorder %s650_s15, %s650_s15 }
   0x5   :  { %p657_p3 = por %p656_p2, %p655_p1 }
   0x7   :  { %p658_p4 = pnand %p657_p3, %p651_p0 }
   0x9   :  { %661 = shalt.err (!%p658_p4)  }
   0xa   :  { %s684_s16 = smov [#allocation3]   ;;  %s662_s17 = scalar_lea.vmem %s20_s14, 16 }
   0xb   :  { %18 = dma.vmem_to_smem %s16_s11, 16, %s684_s16, [#allocation2] }
   0xc   :  { %p663_p5 = scmp.ne.s32.totalorder %s20_s14, %s662_s17  ;;  %p667_p6 = scmp.lt.s32.totalorder %s20_s14, %s20_s14 }
   0xd   :  { %p668_p7 = scmp.lt.s32.totalorder %s662_s17, %s662_s17 }
   0xf   :  { %p669_p8 = por %p668_p7, %p667_p6 }
  0x11   :  { %p670_p9 = pnand %p669_p8, %p663_p5 }
  0x13   :  { %673 = shalt.err (!%p670_p9)  }
  0x14   :  { %s685_s0 = smov [#allocation4]  }
  0x15   :  { %22 = dma.vmem_to_smem %s20_s14, 16, %s685_s0, [#allocation2] }
  0x16   :  { %678 = dma.done.wait [#allocation2], 32 }
  0x17   :  { %679 = vsyncadd [#allocation2], 4294967264 }
  0x18   :  { %24 = sfence }
  0x19   :  { %s744_s1 = smov 0  }
  0x1a LB: > { %s750_s18 = sadd.s32 4294967295, %s682_s1   ;;  %p623_p10 = scmp.ge.s32.totalorder %s682_s1, 1  ;;  %s682_s1 = sphi %s744_s1, %s30_s1  }
  0x1b   : > { %p276_p11 = scmp.lt.s32.totalorder %s682_s1, 65 }
  0x1d   : > { %p277_p12 = pnand %p623_p10, %p276_p11 }
  0x1e   : > { %s317_s19 = sld [smem:[#allocation3 + %s750_s18]] (!%p277_p12)  ;;  %p329_p13 = scmp.lt.s32.totalorder (!%p277_p12), %s750_s18, 63 }
  0x1f   : > { %280 = sbr.rel (%p277_p12) target bundleno = 119 (0x77), region = 40  ;;  %s323_s20 = sld [smem:[#allocation4 + %s750_s18]] (!%p277_p12) }
  0x20   : > { %p626_p2 = scmp.ne.s32.totalorder (!%p277_p12), %s750_s18, 0 }
  0x24   : > { %p318_p0 = scmp.lt.s32.totalorder (!%p277_p12), %s317_s19, 31 }
  0x25   : > { %p324_p1 = scmp.lt.s32.totalorder (!%p277_p12), %s323_s20, 31 }
  0x26   : > { %s758_s21 = scalar_select %p329_p13, %s750_s18, 63 }
  0x27   : > { %s1144_s19 = smov (!%p318_p0, %s317_s19), 31  ;;  %s1146_s20 = smov (!%p324_p1, %s323_s20), 31 }
  0x28   : > { %s331_s24 = scalar_lea.vmem %s1136_s4, %s758_s21  ;;  %s334_s27 = scalar_lea.vmem %s1137_s5, %s758_s21  ;;  %vm342_vm0 = vcmask (!%p626_p2), 253952   ;;  %v686_v0 = vmov (!%p626_p2), 0.0  }
  0x29   : > { %s337_s30 = scalar_lea.vmem %s1139_s7, %s758_s21  ;;  %s624_s10 = sshll.u32 %s1144_s19, 2  ;;  %343 = vst.msk [vmem:[%s1140_s8] sm:$0x1] (!%p626_p2), %vm342_vm0, %v686_v0  ;;  %344 = vst.msk [vmem:[%s1140_s8 + $0x1] sm:$0x1] (!%p626_p2), %vm342_vm0, %v686_v0 }
  0x2a   : > { %s775_s13 = scalar_lea.vmem %s1134_s2, %s624_s10  ;;  %s625_s14 = sshll.u32 %s1146_s20, 2  ;;  %345 = vst.msk [vmem:[%s1140_s8 + $0x2] sm:$0x1] (!%p626_p2), %vm342_vm0, %v686_v0  ;;  %346 = vst.msk [vmem:[%s1140_s8 + $0x3] sm:$0x1] (!%p626_p2), %vm342_vm0, %v686_v0 }
  0x2b   : > { %s780_s17 = scalar_lea.vmem %s1135_s3, %s625_s14  ;;  %341 = sbr.rel (%p626_p2) target bundleno = 73 (0x49), region = 44  ;;  %347 = vst.msk [vmem:[%s1140_s8 + $0x4] sm:$0x1] (!%p626_p2), %vm342_vm0, %v686_v0  ;;  %348 = vst.msk [vmem:[%s1140_s8 + $0x5] sm:$0x1] (!%p626_p2), %vm342_vm0, %v686_v0 }
  0x2c   : > { %349 = vst.msk [vmem:[%s1140_s8 + $0x6] sm:$0x1] (!%p626_p2), %vm342_vm0, %v686_v0  ;;  %350 = vst.msk [vmem:[%s1140_s8 + $0x7] sm:$0x1] (!%p626_p2), %vm342_vm0, %v686_v0 }
  0x2d   : > { %351 = vst.msk [vmem:[%s1140_s8 + $0x8] sm:$0x1] (!%p626_p2), %vm342_vm0, %v686_v0  ;;  %352 = vst.msk [vmem:[%s1140_s8 + $0x9] sm:$0x1] (!%p626_p2), %vm342_vm0, %v686_v0 }
  0x2e   : > { %353 = vst.msk [vmem:[%s1140_s8 + $0xa] sm:$0x1] (!%p626_p2), %vm342_vm0, %v686_v0  ;;  %354 = vst.msk [vmem:[%s1140_s8 + $0xb] sm:$0x1] (!%p626_p2), %vm342_vm0, %v686_v0 }
  0x2f   : > { %355 = vst.msk [vmem:[%s1140_s8 + $0xc] sm:$0x1] (!%p626_p2), %vm342_vm0, %v686_v0  ;;  %356 = vst.msk [vmem:[%s1140_s8 + $0xd] sm:$0x1] (!%p626_p2), %vm342_vm0, %v686_v0 }
  0x30   : > { %357 = vst.msk [vmem:[%s1140_s8 + $0xe] sm:$0x1] (!%p626_p2), %vm342_vm0, %v686_v0  ;;  %358 = vst.msk [vmem:[%s1140_s8 + $0xf] sm:$0x1] (!%p626_p2), %vm342_vm0, %v686_v0 }
  0x31   : > { %359 = vst.msk [vmem:[%s1140_s8 + $0x10] sm:$0x1] (!%p626_p2), %vm342_vm0, %v686_v0  ;;  %360 = vst.msk [vmem:[%s1140_s8 + $0x11] sm:$0x1] (!%p626_p2), %vm342_vm0, %v686_v0 }
  0x32   : > { %361 = vst.msk [vmem:[%s1140_s8 + $0x12] sm:$0x1] %vm342_vm0, %v686_v0  ;;  %362 = vst.msk [vmem:[%s1140_s8 + $0x13] sm:$0x1] %vm342_vm0, %v686_v0 }
  0x33   : > { %363 = vst.msk [vmem:[%s1140_s8 + $0x14] sm:$0x1] %vm342_vm0, %v686_v0  ;;  %364 = vst.msk [vmem:[%s1140_s8 + $0x15] sm:$0x1] %vm342_vm0, %v686_v0 }
  0x34   : > { %365 = vst.msk [vmem:[%s1140_s8 + $0x16] sm:$0x1] %vm342_vm0, %v686_v0  ;;  %366 = vst.msk [vmem:[%s1140_s8 + $0x17] sm:$0x1] %vm342_vm0, %v686_v0 }
  0x35   : > { %367 = vst.msk [vmem:[%s1140_s8 + $0x18] sm:$0x1] %vm342_vm0, %v686_v0  ;;  %368 = vst.msk [vmem:[%s1140_s8 + $0x19] sm:$0x1] %vm342_vm0, %v686_v0 }
  0x36   : > { %369 = vst.msk [vmem:[%s1140_s8 + $0x1a] sm:$0x1] %vm342_vm0, %v686_v0  ;;  %370 = vst.msk [vmem:[%s1140_s8 + $0x1b] sm:$0x1] %vm342_vm0, %v686_v0 }
  0x37   : > { %371 = vst.msk [vmem:[%s1140_s8 + $0x1c] sm:$0x1] %vm342_vm0, %v686_v0  ;;  %372 = vst.msk [vmem:[%s1140_s8 + $0x1d] sm:$0x1] %vm342_vm0, %v686_v0 }
  0x38   : > { %373 = vst.msk [vmem:[%s1140_s8 + $0x1e] sm:$0x1] %vm342_vm0, %v686_v0  ;;  %374 = vst.msk [vmem:[%s1140_s8 + $0x1f] sm:$0x1] %vm342_vm0, %v686_v0 }
  0x39   : > { %375 = vst.msk [vmem:[%s1141_s9] sm:$0x1] %vm342_vm0, %v686_v0  ;;  %376 = vst.msk [vmem:[%s1141_s9 + $0x1] sm:$0x1] %vm342_vm0, %v686_v0 }
  0x3a   : > { %377 = vst.msk [vmem:[%s1141_s9 + $0x2] sm:$0x1] %vm342_vm0, %v686_v0  ;;  %378 = vst.msk [vmem:[%s1141_s9 + $0x3] sm:$0x1] %vm342_vm0, %v686_v0 }
  0x3b   : > { %379 = vst.msk [vmem:[%s1141_s9 + $0x4] sm:$0x1] %vm342_vm0, %v686_v0  ;;  %380 = vst.msk [vmem:[%s1141_s9 + $0x5] sm:$0x1] %vm342_vm0, %v686_v0 }
  0x3c   : > { %381 = vst.msk [vmem:[%s1141_s9 + $0x6] sm:$0x1] %vm342_vm0, %v686_v0  ;;  %382 = vst.msk [vmem:[%s1141_s9 + $0x7] sm:$0x1] %vm342_vm0, %v686_v0 }
  0x3d   : > { %383 = vst.msk [vmem:[%s1141_s9 + $0x8] sm:$0x1] %vm342_vm0, %v686_v0  ;;  %384 = vst.msk [vmem:[%s1141_s9 + $0x9] sm:$0x1] %vm342_vm0, %v686_v0 }
  0x3e   : > { %385 = vst.msk [vmem:[%s1141_s9 + $0xa] sm:$0x1] %vm342_vm0, %v686_v0  ;;  %386 = vst.msk [vmem:[%s1141_s9 + $0xb] sm:$0x1] %vm342_vm0, %v686_v0 }
  0x3f   : > { %387 = vst.msk [vmem:[%s1141_s9 + $0xc] sm:$0x1] %vm342_vm0, %v686_v0  ;;  %388 = vst.msk [vmem:[%s1141_s9 + $0xd] sm:$0x1] %vm342_vm0, %v686_v0 }
  0x40   : > { %389 = vst.msk [vmem:[%s1141_s9 + $0xe] sm:$0x1] %vm342_vm0, %v686_v0  ;;  %390 = vst.msk [vmem:[%s1141_s9 + $0xf] sm:$0x1] %vm342_vm0, %v686_v0 }
  0x41   : > { %391 = vst.msk [vmem:[%s1141_s9 + $0x10] sm:$0x1] %vm342_vm0, %v686_v0  ;;  %392 = vst.msk [vmem:[%s1141_s9 + $0x11] sm:$0x1] %vm342_vm0, %v686_v0 }
  0x42   : > { %393 = vst.msk [vmem:[%s1141_s9 + $0x12] sm:$0x1] %vm342_vm0, %v686_v0  ;;  %394 = vst.msk [vmem:[%s1141_s9 + $0x13] sm:$0x1] %vm342_vm0, %v686_v0 }
  0x43   : > { %395 = vst.msk [vmem:[%s1141_s9 + $0x14] sm:$0x1] %vm342_vm0, %v686_v0  ;;  %396 = vst.msk [vmem:[%s1141_s9 + $0x15] sm:$0x1] %vm342_vm0, %v686_v0 }
  0x44   : > { %397 = vst.msk [vmem:[%s1141_s9 + $0x16] sm:$0x1] %vm342_vm0, %v686_v0  ;;  %398 = vst.msk [vmem:[%s1141_s9 + $0x17] sm:$0x1] %vm342_vm0, %v686_v0 }
  0x45   : > { %399 = vst.msk [vmem:[%s1141_s9 + $0x18] sm:$0x1] %vm342_vm0, %v686_v0  ;;  %400 = vst.msk [vmem:[%s1141_s9 + $0x19] sm:$0x1] %vm342_vm0, %v686_v0 }
  0x46   : > { %401 = vst.msk [vmem:[%s1141_s9 + $0x1a] sm:$0x1] %vm342_vm0, %v686_v0  ;;  %402 = vst.msk [vmem:[%s1141_s9 + $0x1b] sm:$0x1] %vm342_vm0, %v686_v0 }
  0x47   : > { %403 = vst.msk [vmem:[%s1141_s9 + $0x1c] sm:$0x1] %vm342_vm0, %v686_v0  ;;  %404 = vst.msk [vmem:[%s1141_s9 + $0x1d] sm:$0x1] %vm342_vm0, %v686_v0 }
  0x48   : > { %405 = vst.msk [vmem:[%s1141_s9 + $0x1e] sm:$0x1] %vm342_vm0, %v686_v0  ;;  %406 = vst.msk [vmem:[%s1141_s9 + $0x1f] sm:$0x1] %vm342_vm0, %v686_v0 }
  0x49 PF: > { %v421_v1 = vlaneseq  ;;  %v628_v2 = vld.sshfl [vmem:[%s780_s17] sm:$0x33 pattern:$0x75316420]  ;;  %v687_v3 = vmov 1966171168  }
  0x4a   : > { %v419_v4 = vunpack.c.l.s4 %v687_v3  ;;  %v473_v6 = vld [vmem:[%s1138_s6] sm:$0xf]  ;;  %v436_v9 = vcombine.high %v628_v2, %v628_v2  ;;  %vm467_vm1 = vcmask 253952  }
  0x4b   : > { %v422_v5 = vshrl.u32 %v421_v1, 7  ;;  %v492_v7 = vadd.f32 1e-05, %v473_v6  ;;  %v409_v15 = vld [vmem:[%s331_s24] sm:$0x1]  ;;  %s463_s24 = sld [smem:[#allocation4 + %s750_s18]] }
  0x4c   : > { %v420_v8 = vunpack.c.0.s8 %v419_v4  ;;  %v627_v10 = vld.sshfl [vmem:[%s775_s13] sm:$0x33 pattern:$0x75316420] }
  0x4d   : > { %644 = vrsqrt.f32 %v492_v7  ;;  %v525_v36 = vld [vmem:[%s334_s27] sm:$0x1]  ;;  %v453_v39 = vcombine.high %v627_v10, %v627_v10 }
  0x4e   : > { %v423_v11 = vsub.s32 %v420_v8, %v422_v5 }
  0x50   : > { %v424_v12 = vrot.slane %v627_v10, %v423_v11  ;;  %v443_v13 = vrot.slane %v436_v9, %v423_v11  ;;  %v481_v14 = vrot.slane %v473_v6, %v423_v11  ;;  %v460_v40 = vrot.slane %v453_v39, %v423_v11 }
  0x51   : > { %s469_s18 = scalar_lea.vmem %s1141_s9, %s463_s24  ;;  %s464_s20 = scalar_lea.vmem %s1140_s8, %s463_s24 }
  0x52   : > { %v425_v16 = vcombine.high %v424_v12, %v424_v12  ;;  %v444_v17 = vcombine.high %v443_v13, %v443_v13  ;;  %v488_v19 = vrot.slane %v481_v14, %v423_v11  ;;  %v514_v28 = vcombine.high %v481_v14, %v481_v14  ;;  %v470_v41 = vld [vmem:[%s469_s18] sm:$0x1] }
  0x53   : > { %v465_v43 = vld [vmem:[%s464_s20] sm:$0x1] }
  0x54   : > { %v427_v18 = vadd.f32 %v425_v16, %v409_v15  ;;  %v489_v23 = vcombine.high %v488_v19, %v488_v19  ;;  %v521_v31 = vrot.slane %v514_v28, %v423_v11 }
  0x56   : > { %v446_v20 = vadd.f32 %v444_v17, %v427_v18 }
  0x57   : > { %v645_v21 = vpop.eup %644 }
  0x58   : > { %v629_v22 = vmul.f32 -1.442695, %v446_v20  ;;  %v501_v24 = vrot.slane %v645_v21, %v423_v11  ;;  %v491_v26 = vsub.f32 %v446_v20, %v489_v23 }
  0x5a   : > { %646 = vpow2.f32 %v629_v22  ;;  %v502_v25 = vcombine.high %v501_v24, %v501_v24 }
  0x5c   : > { %v509_v27 = vrot.slane %v502_v25, %v423_v11 }
  0x5e   : > { %v510_v29 = vcombine.high %v509_v27, %v509_v27 }
  0x60   : > { %v512_v30 = vmul.f32 %v510_v29, %v491_v26 }
  0x62   : > { %v513_v32 = vmul.f32 %v512_v30, %v473_v6 }
  0x64   : > { %v647_v33 = vpop.eup %646  ;;  %v523_v34 = vadd.f32 %v521_v31, %v513_v32 }
  0x65   : > { %v450_v35 = vadd.f32 1.0, %v647_v33 }
  0x66   : > { %v524_v37 = vmax.f32 %v523_v34, 0.0 }
  0x67   : > { %648 = vrcp.f32 %v450_v35 }
  0x68   : > { %v526_v38 = vadd.f32 %v525_v36, %v524_v37 }
  0x6a   : > { %527 = vst.msk [vmem:[%s337_s30] sm:$0x1] %vm467_vm1, %v526_v38 }
  0x71   : > { %v649_v42 = vpop.eup %648 }
  0x72   : > { %v462_v44 = vmul.f32 %v649_v42, %v460_v40  ;;  %v471_v45 = vadd.f32 %v649_v42, %v470_v41 }
  0x74   : > { %v466_v46 = vadd.f32 %v465_v43, %v462_v44  ;;  %472 = vst.msk [vmem:[%s469_s18] sm:$0x1] %vm467_vm1, %v471_v45 }
  0x76   : > { %468 = vst.msk [vmem:[%s464_s20] sm:$0x1] %vm467_vm1, %v466_v46 }
  0x77 PF: > { %s30_s1 = sadd.s32 1, %s682_s1  }
  0x78   : > { %p27_p3 = scmp.ge.s32.totalorder %s30_s1, 66  }
  0x7a   :  { %29 = sbr.rel (!%p27_p3) target bundleno = 26 (0x1a), region = 101 }

// kernel: gated_gcn_net_forward.26
= control target key start
LH: loop header
LB: loop body
LE: loop exit
PB: predicated region body
PF: predicated region fallthrough
CT: control target
= control target key end

     0   :  { %s1346_s0 = inlined_call_operand.vmem [shape: s32[64], index: 0, kind: input, shape index: {}]   ;;  %s1347_s2 = inlined_call_operand.vmem [shape: f32[32,4,32], index: 2, kind: input, shape index: {}, may-alias: {2,3}]   ;;  %s1348_s3 = inlined_call_operand.vmem [shape: f32[32,4,32], index: 3, kind: input, shape index: {}, may-alias: {2,3}]   ;;  %s1349_s4 = inlined_call_operand.vmem [shape: f32[64,1,32], index: 4, kind: input, shape index: {}]   ;;  %s1350_s5 = inlined_call_operand.vmem [shape: f32[64,1,32], index: 5, kind: input, shape index: {}]   ;;  %s1351_s6 = inlined_call_operand.vmem [shape: f32[4,32], index: 6, kind: input, shape index: {}]   ;;  %s1352_s7 = inlined_call_operand.hbm [shape: f32[64,1,32], index: 7, kind: output, shape index: {0}]   ;;  %s1353_s8 = inlined_call_operand.vmem [shape: f32[32,1,32], index: 8, kind: output, shape index: {1}]   ;;  %s1354_s9 = inlined_call_operand.vmem [shape: f32[32,1,32], index: 9, kind: output, shape index: {2}]   ;;  %s1355_s1 = inlined_call_operand.vmem [shape: s32[64], index: 1, kind: input, shape index: {}]  }
   0x1   :  { %s15_s11 = sshll.u32 %s1346_s0, 4  ;;  %s19_s14 = sshll.u32 %s1355_s1, 4  ;;  %s16_s11 = int_to_ptr.vmem [resolvable:$true] %s15_s11  ;;  %s20_s14 = int_to_ptr.vmem [resolvable:$true] %s19_s14 }
   0x2   :  { %s703_s15 = scalar_lea.vmem %s16_s11, 16  ;;  %p708_p1 = scmp.lt.s32.totalorder %s16_s11, %s16_s11 }
   0x3   :  { %p704_p0 = scmp.ne.s32.totalorder %s16_s11, %s703_s15  ;;  %p709_p2 = scmp.lt.s32.totalorder %s703_s15, %s703_s15 }
   0x5   :  { %p710_p3 = por %p709_p2, %p708_p1 }
   0x7   :  { %p711_p4 = pnand %p710_p3, %p704_p0 }
   0x9   :  { %714 = shalt.err (!%p711_p4)  }
   0xa   :  { %s793_s16 = smov [#allocation3]   ;;  %s715_s17 = scalar_lea.vmem %s20_s14, 16 }
   0xb   :  { %18 = dma.vmem_to_smem %s16_s11, 16, %s793_s16, [#allocation2] }
   0xc   :  { %p716_p5 = scmp.ne.s32.totalorder %s20_s14, %s715_s17  ;;  %p720_p6 = scmp.lt.s32.totalorder %s20_s14, %s20_s14 }
   0xd   :  { %p721_p7 = scmp.lt.s32.totalorder %s715_s17, %s715_s17 }
   0xf   :  { %p722_p8 = por %p721_p7, %p720_p6 }
  0x11   :  { %p723_p9 = pnand %p722_p8, %p716_p5 }
  0x13   :  { %726 = shalt.err (!%p723_p9)  }
  0x14   :  { %s794_s0 = smov [#allocation4]  }
  0x15   :  { %22 = dma.vmem_to_smem %s20_s14, 16, %s794_s0, [#allocation2] }
  0x16   :  { %771 = dma.done.wait [#allocation2], 32 }
  0x17   :  { %772 = vsyncadd [#allocation2], 4294967264 }
  0x18   :  { %24 = sfence }
  0x19   :  { %25 = vsyncpa [#allocation6], 0 }
  0x1a   :  { %27 = vsyncpa [#allocation6 + $0x1], 0  ;;  %s854_s1 = smov 0   ;;  %s856_s18 = smov 0  }
  0x1b   :  { %s858_s19 = smov 0   ;;  %s860_s20 = smov 0  }
  0x1c LB: > { %1359 = sst [smem:[#allocation9_spill]] %s787_s19  ;;  %s875_s21 = sadd.s32 4294967295, %s791_s20   ;;  %s791_s20 = sphi %s860_s20, %s1366_s20   ;;  %s787_s19 = sphi %s858_s19, %s1368_s19   ;;  %s783_s18 = sphi %s856_s18, %s1370_s18   ;;  %s779_s1 = sphi %s854_s1, %s1369_s1  }
  0x1d   : > { %s641_s22 = sadd.s32 4294967294, %s791_s20   ;;  %s879_s23 = sadd.s32 1, %s791_s20  }
  0x1e   : > { %1360 = sst [smem:[#allocation10_spill]] %s879_s23  ;;  %s169_s24 = sadd.s32 1, %s787_s19 }
  0x1f   : > { %s166_s25 = ssub.s32 %s791_s20, %s879_s23  ;;  %p179_p10 = scmp.ne.s32.totalorder %s787_s19, %s783_s18 }
  0x20   : > { %p167_p11 = scmp.eq.s32.totalorder %s166_s25, 0  ;;  %p180_p12 = scmp.eq.s32.totalorder %s875_s21, 63 }
  0x21   : > { %p185_p13 = scmp.ne.s32.totalorder %s783_s18, %s779_s1  ;;  %p186_p0 = scmp.eq.s32.totalorder %s641_s22, 63 }
  0x22   : > { %s890_s26 = scalar_select %p167_p11, %s787_s19, %s169_s24  }
  0x23   : > { %p892_p1 = por %p180_p12, %p179_p10  ;;  %p896_p2 = por %p186_p0, %p185_p13 }
  0x24   : > { %1361 = sst [smem:[#allocation11_spill]] %s890_s26  ;;  %p644_p3 = scmp.ge.s32.totalorder %s791_s20, 1 }
  0x25   : > { %p279_p4 = scmp.lt.s32.totalorder %s791_s20, 65 }
  0x27   : > { %p280_p5 = pnand %p644_p3, %p279_p4 }
  0x28   : > { %s321_s30 = sld [smem:[#allocation3 + %s875_s21]] (!%p280_p5)  ;;  %p333_p6 = scmp.lt.s32.totalorder (!%p280_p5), %s875_s21, 63 }
  0x29   : > { %283 = sbr.rel (%p280_p5) target bundleno = 136 (0x88), region = 40  ;;  %s327_s10 = sld [smem:[#allocation4 + %s875_s21]] (!%p280_p5) }
  0x2a   : > { %s1364_s12 = sand.u32 (!%p280_p5), 1, %s783_s18   ;;  %p647_p9 = scmp.ne.s32.totalorder (!%p280_p5), %s875_s21, 0 }
  0x2b   : > { %s929_s13 = scalar_lea.vmem (!%p280_p5), [#allocation5], %s1364_s12 }
  0x2e   : > { %p322_p7 = scmp.lt.s32.totalorder (!%p280_p5), %s321_s30, 31 }
  0x2f   : > { %p328_p8 = scmp.lt.s32.totalorder (!%p280_p5), %s327_s10, 31 }
  0x30   : > { %s907_s11 = scalar_select %p333_p6, %s875_s21, 63 }
  0x31   : > { %s1372_s30 = smov (!%p322_p7, %s321_s30), 31  ;;  %s1374_s10 = smov (!%p328_p8, %s327_s10), 31 }
  0x32   : > { %s335_s14 = scalar_lea.vmem %s1349_s4, %s907_s11  ;;  %s338_s17 = scalar_lea.vmem %s1350_s5, %s907_s11  ;;  %vm343_vm0 = vcmask (!%p647_p9), 253952   ;;  %v795_v0 = vmov (!%p647_p9), 0.0  }
  0x33   : > { %s645_s0 = sshll.u32 %s1372_s30, 2  ;;  %s646_s29 = sshll.u32 %s1374_s10, 2  ;;  %344 = vst.msk [vmem:[%s1353_s8] sm:$0x1] (!%p647_p9), %vm343_vm0, %v795_v0  ;;  %345 = vst.msk [vmem:[%s1353_s8 + $0x1] sm:$0x1] (!%p647_p9), %vm343_vm0, %v795_v0 }
  0x34   : > { %s920_s25 = scalar_lea.vmem %s1347_s2, %s645_s0  ;;  %s925_s23 = scalar_lea.vmem %s1348_s3, %s646_s29  ;;  %346 = vst.msk [vmem:[%s1353_s8 + $0x2] sm:$0x1] (!%p647_p9), %vm343_vm0, %v795_v0  ;;  %347 = vst.msk [vmem:[%s1353_s8 + $0x3] sm:$0x1] (!%p647_p9), %vm343_vm0, %v795_v0 }
  0x35   : > { %342 = sbr.rel (%p647_p9) target bundleno = 83 (0x53), region = 44  ;;  %348 = vst.msk [vmem:[%s1353_s8 + $0x4] sm:$0x1] (!%p647_p9), %vm343_vm0, %v795_v0  ;;  %349 = vst.msk [vmem:[%s1353_s8 + $0x5] sm:$0x1] (!%p647_p9), %vm343_vm0, %v795_v0 }
  0x36   : > { %350 = vst.msk [vmem:[%s1353_s8 + $0x6] sm:$0x1] (!%p647_p9), %vm343_vm0, %v795_v0  ;;  %351 = vst.msk [vmem:[%s1353_s8 + $0x7] sm:$0x1] (!%p647_p9), %vm343_vm0, %v795_v0 }
  0x37   : > { %352 = vst.msk [vmem:[%s1353_s8 + $0x8] sm:$0x1] (!%p647_p9), %vm343_vm0, %v795_v0  ;;  %353 = vst.msk [vmem:[%s1353_s8 + $0x9] sm:$0x1] (!%p647_p9), %vm343_vm0, %v795_v0 }
  0x38   : > { %354 = vst.msk [vmem:[%s1353_s8 + $0xa] sm:$0x1] (!%p647_p9), %vm343_vm0, %v795_v0  ;;  %355 = vst.msk [vmem:[%s1353_s8 + $0xb] sm:$0x1] (!%p647_p9), %vm343_vm0, %v795_v0 }
  0x39   : > { %356 = vst.msk [vmem:[%s1353_s8 + $0xc] sm:$0x1] (!%p647_p9), %vm343_vm0, %v795_v0  ;;  %357 = vst.msk [vmem:[%s1353_s8 + $0xd] sm:$0x1] (!%p647_p9), %vm343_vm0, %v795_v0 }
  0x3a   : > { %358 = vst.msk [vmem:[%s1353_s8 + $0xe] sm:$0x1] (!%p647_p9), %vm343_vm0, %v795_v0  ;;  %359 = vst.msk [vmem:[%s1353_s8 + $0xf] sm:$0x1] (!%p647_p9), %vm343_vm0, %v795_v0 }
  0x3b   : > { %360 = vst.msk [vmem:[%s1353_s8 + $0x10] sm:$0x1] (!%p647_p9), %vm343_vm0, %v795_v0  ;;  %361 = vst.msk [vmem:[%s1353_s8 + $0x11] sm:$0x1] (!%p647_p9), %vm343_vm0, %v795_v0 }
  0x3c   : > { %362 = vst.msk [vmem:[%s1353_s8 + $0x12] sm:$0x1] %vm343_vm0, %v795_v0  ;;  %363 = vst.msk [vmem:[%s1353_s8 + $0x13] sm:$0x1] %vm343_vm0, %v795_v0 }
  0x3d   : > { %364 = vst.msk [vmem:[%s1353_s8 + $0x14] sm:$0x1] %vm343_vm0, %v795_v0  ;;  %365 = vst.msk [vmem:[%s1353_s8 + $0x15] sm:$0x1] %vm343_vm0, %v795_v0 }
  0x3e   : > { %366 = vst.msk [vmem:[%s1353_s8 + $0x16] sm:$0x1] %vm343_vm0, %v795_v0  ;;  %367 = vst.msk [vmem:[%s1353_s8 + $0x17] sm:$0x1] %vm343_vm0, %v795_v0 }
  0x3f   : > { %368 = vst.msk [vmem:[%s1353_s8 + $0x18] sm:$0x1] %vm343_vm0, %v795_v0  ;;  %369 = vst.msk [vmem:[%s1353_s8 + $0x19] sm:$0x1] %vm343_vm0, %v795_v0 }
  0x40   : > { %370 = vst.msk [vmem:[%s1353_s8 + $0x1a] sm:$0x1] %vm343_vm0, %v795_v0  ;;  %371 = vst.msk [vmem:[%s1353_s8 + $0x1b] sm:$0x1] %vm343_vm0, %v795_v0 }
  0x41   : > { %372 = vst.msk [vmem:[%s1353_s8 + $0x1c] sm:$0x1] %vm343_vm0, %v795_v0  ;;  %373 = vst.msk [vmem:[%s1353_s8 + $0x1d] sm:$0x1] %vm343_vm0, %v795_v0 }
  0x42   : > { %374 = vst.msk [vmem:[%s1353_s8 + $0x1e] sm:$0x1] %vm343_vm0, %v795_v0  ;;  %375 = vst.msk [vmem:[%s1353_s8 + $0x1f] sm:$0x1] %vm343_vm0, %v795_v0 }
  0x43   : > { %376 = vst.msk [vmem:[%s1354_s9] sm:$0x1] %vm343_vm0, %v795_v0  ;;  %377 = vst.msk [vmem:[%s1354_s9 + $0x1] sm:$0x1] %vm343_vm0, %v795_v0 }
  0x44   : > { %378 = vst.msk [vmem:[%s1354_s9 + $0x2] sm:$0x1] %vm343_vm0, %v795_v0  ;;  %379 = vst.msk [vmem:[%s1354_s9 + $0x3] sm:$0x1] %vm343_vm0, %v795_v0 }
  0x45   : > { %380 = vst.msk [vmem:[%s1354_s9 + $0x4] sm:$0x1] %vm343_vm0, %v795_v0  ;;  %381 = vst.msk [vmem:[%s1354_s9 + $0x5] sm:$0x1] %vm343_vm0, %v795_v0 }
  0x46   : > { %382 = vst.msk [vmem:[%s1354_s9 + $0x6] sm:$0x1] %vm343_vm0, %v795_v0  ;;  %383 = vst.msk [vmem:[%s1354_s9 + $0x7] sm:$0x1] %vm343_vm0, %v795_v0 }
  0x47   : > { %384 = vst.msk [vmem:[%s1354_s9 + $0x8] sm:$0x1] %vm343_vm0, %v795_v0  ;;  %385 = vst.msk [vmem:[%s1354_s9 + $0x9] sm:$0x1] %vm343_vm0, %v795_v0 }
  0x48   : > { %386 = vst.msk [vmem:[%s1354_s9 + $0xa] sm:$0x1] %vm343_vm0, %v795_v0  ;;  %387 = vst.msk [vmem:[%s1354_s9 + $0xb] sm:$0x1] %vm343_vm0, %v795_v0 }
  0x49   : > { %388 = vst.msk [vmem:[%s1354_s9 + $0xc] sm:$0x1] %vm343_vm0, %v795_v0  ;;  %389 = vst.msk [vmem:[%s1354_s9 + $0xd] sm:$0x1] %vm343_vm0, %v795_v0 }
  0x4a   : > { %390 = vst.msk [vmem:[%s1354_s9 + $0xe] sm:$0x1] %vm343_vm0, %v795_v0  ;;  %391 = vst.msk [vmem:[%s1354_s9 + $0xf] sm:$0x1] %vm343_vm0, %v795_v0 }
  0x4b   : > { %392 = vst.msk [vmem:[%s1354_s9 + $0x10] sm:$0x1] %vm343_vm0, %v795_v0  ;;  %393 = vst.msk [vmem:[%s1354_s9 + $0x11] sm:$0x1] %vm343_vm0, %v795_v0 }
  0x4c   : > { %394 = vst.msk [vmem:[%s1354_s9 + $0x12] sm:$0x1] %vm343_vm0, %v795_v0  ;;  %395 = vst.msk [vmem:[%s1354_s9 + $0x13] sm:$0x1] %vm343_vm0, %v795_v0 }
  0x4d   : > { %396 = vst.msk [vmem:[%s1354_s9 + $0x14] sm:$0x1] %vm343_vm0, %v795_v0  ;;  %397 = vst.msk [vmem:[%s1354_s9 + $0x15] sm:$0x1] %vm343_vm0, %v795_v0 }
  0x4e   : > { %398 = vst.msk [vmem:[%s1354_s9 + $0x16] sm:$0x1] %vm343_vm0, %v795_v0  ;;  %399 = vst.msk [vmem:[%s1354_s9 + $0x17] sm:$0x1] %vm343_vm0, %v795_v0 }
  0x4f   : > { %400 = vst.msk [vmem:[%s1354_s9 + $0x18] sm:$0x1] %vm343_vm0, %v795_v0  ;;  %401 = vst.msk [vmem:[%s1354_s9 + $0x19] sm:$0x1] %vm343_vm0, %v795_v0 }
  0x50   : > { %402 = vst.msk [vmem:[%s1354_s9 + $0x1a] sm:$0x1] %vm343_vm0, %v795_v0  ;;  %403 = vst.msk [vmem:[%s1354_s9 + $0x1b] sm:$0x1] %vm343_vm0, %v795_v0 }
  0x51   : > { %404 = vst.msk [vmem:[%s1354_s9 + $0x1c] sm:$0x1] %vm343_vm0, %v795_v0  ;;  %405 = vst.msk [vmem:[%s1354_s9 + $0x1d] sm:$0x1] %vm343_vm0, %v795_v0 }
  0x52   : > { %406 = vst.msk [vmem:[%s1354_s9 + $0x1e] sm:$0x1] %vm343_vm0, %v795_v0  ;;  %407 = vst.msk [vmem:[%s1354_s9 + $0x1f] sm:$0x1] %vm343_vm0, %v795_v0 }
  0x53 PF: > { %v422_v1 = vlaneseq  ;;  %v649_v2 = vld.sshfl [vmem:[%s925_s23] sm:$0x33 pattern:$0x75316420]  ;;  %v796_v3 = vmov 1966171168  }
  0x54   : > { %v420_v4 = vunpack.c.l.s4 %v796_v3  ;;  %v474_v6 = vld [vmem:[%s1351_s6] sm:$0xf]  ;;  %v437_v9 = vcombine.high %v649_v2, %v649_v2  ;;  %s651_s30 = sshll.u32 %s875_s21, 4  ;;  %s542_s15 = sshll.u32 %s929_s13, 4  ;;  %vm468_vm1 = vcmask 253952   ;;  %s1289_s15 = int_to_ptr.vmem [resolvable:$true] %s542_s15 }
  0x55   : > { %v423_v5 = vshrl.u32 %v422_v1, 7  ;;  %v493_v7 = vadd.f32 1e-05, %v474_v6  ;;  %v410_v15 = vld [vmem:[%s335_s14] sm:$0x1]  ;;  %s1275_s14 = sld [smem:[#allocation4 + %s875_s21]]  ;;  %s1287_s26 = scalar_lea.hbm %s1352_s7, %s651_s30 }
  0x56   : > { %v421_v8 = vunpack.c.0.s8 %v420_v4  ;;  %v1257_v10 = vld.sshfl [vmem:[%s920_s25] sm:$0x33 pattern:$0x75316420]  ;;  %s1365_s21 = sand.u32 1, %s783_s18   ;;  %s797_s29 = smov [#allocation5]  }
  0x57   : > { %697 = vrsqrt.f32 %v493_v7  ;;  %v526_v36 = vld [vmem:[%s338_s17] sm:$0x1]  ;;  %v454_v39 = vcombine.high %v1257_v10, %v1257_v10  ;;  %s530_s11 = scalar_lea.sflag [#allocation6], %s1365_s21  ;;  %s727_s17 = scalar_lea.vmem %s1289_s15, 16 }
  0x58   : > { %v1259_v11 = vsub.s32 %v421_v8, %v423_v5  ;;  %p728_p10 = scmp.ne.s32.totalorder %s1289_s15, %s727_s17  ;;  %s731_s16 = sshll.u32 %s797_s29, 4  ;;  %s732_s16 = int_to_ptr.vmem [resolvable:$false] %s731_s16 }
  0x59   : > { %s733_s0 = scalar_lea.vmem %s732_s16, 32  ;;  %p734_p13 = scmp.lt.s32.totalorder %s1289_s15, %s732_s16 }
  0x5a   : > { %v425_v12 = vrot.slane %v1257_v10, %v1259_v11  ;;  %v444_v13 = vrot.slane %v437_v9, %v1259_v11  ;;  %v482_v14 = vrot.slane %v474_v6, %v1259_v11  ;;  %p729_p11 = pnand %p728_p10, %p892_p1  ;;  %p735_p0 = scmp.lt.s32.totalorder %s733_s0, %s727_s17 }
  0x5c   : > { %v426_v16 = vcombine.high %v425_v12, %v425_v12  ;;  %v445_v17 = vcombine.high %v444_v13, %v444_v13  ;;  %v489_v19 = vrot.slane %v482_v14, %v1259_v11  ;;  %v515_v28 = vcombine.high %v482_v14, %v482_v14  ;;  %p730_p12 = pneg %p729_p11  ;;  %p736_p3 = por %p735_p0, %p734_p13 }
  0x5e   : > { %v428_v18 = vadd.f32 %v426_v16, %v410_v15  ;;  %v490_v23 = vcombine.high %v489_v19, %v489_v19  ;;  %v522_v31 = vrot.slane %v515_v28, %v1259_v11  ;;  %p737_p4 = pnand %p736_p3, %p730_p12 }
  0x60   : > { %v447_v20 = vadd.f32 %v445_v17, %v428_v18 }
  0x61   : > { %v698_v21 = vpop.eup %697 }
  0x62   : > { %v650_v22 = vmul.f32 -1.442695, %v447_v20  ;;  %v502_v24 = vrot.slane %v698_v21, %v1259_v11  ;;  %v492_v26 = vsub.f32 %v447_v20, %v490_v23 }
  0x64   : > { %699 = vpow2.f32 %v650_v22  ;;  %v503_v25 = vcombine.high %v502_v24, %v502_v24 }
  0x66   : > { %v510_v27 = vrot.slane %v503_v25, %v1259_v11 }
  0x68   : > { %v511_v29 = vcombine.high %v510_v27, %v510_v27 }
  0x6a   : > { %v513_v30 = vmul.f32 %v511_v29, %v492_v26 }
  0x6c   : > { %v514_v32 = vmul.f32 %v513_v30, %v474_v6 }
  0x6e   : > { %v700_v33 = vpop.eup %699  ;;  %v524_v34 = vadd.f32 %v522_v31, %v514_v32 }
  0x6f   : > { %v451_v35 = vadd.f32 1.0, %v700_v33 }
  0x70   : > { %v525_v37 = vmax.f32 %v524_v34, 0.0 }
  0x71   : > { %701 = vrcp.f32 %v451_v35 }
  0x72   : > { %v527_v38 = vadd.f32 %v526_v36, %v525_v37 }
  0x74   : > { %528 = vst.msk [vmem:[%s929_s13] sm:$0x1] %vm468_vm1, %v527_v38 }
  0x75   : > { %740 = shalt.err (!%p737_p4)
}
  0x76   : > { %s741_s13 = scalar_lea.hbm %s1287_s26, 16  ;;  %s745_s24 = scalar_lea.hbm %s1352_s7, 1024 }
  0x77   : > { %p742_p5 = scmp.ne.s32.totalorder %s1287_s26, %s741_s13  ;;  %p746_p8 = scmp.lt.u32.totalorder %s1287_s26, %s1352_s7 }
  0x78   : > { %p747_p9 = scmp.lt.u32.totalorder %s745_s24, %s741_s13  ;;  %p749_p11 = scmp.lt.u32.totalorder %s741_s13, %s1287_s26 }
  0x79   : > { %p743_p6 = pnand %p742_p5, %p892_p1 }
  0x7a   : > { %p748_p10 = por %p747_p9, %p746_p8 }
  0x7b   : > { %p744_p7 = pneg %p743_p6 }
  0x7c   : > { %p750_p12 = por %p749_p11, %p748_p10 }
  0x7e   : > { %p751_p13 = pnand %p750_p12, %p744_p7 }
  0x80   : > { %754 = shalt.err (!%p751_p13)
}
  0x81   : > { %654 = dma.vmem_to_hbm [thread:$0]  (%p892_p1), %s1289_s15, 16, %s1287_s26, %s530_s11   ;;  %v461_v40 = vrot.slane %v454_v39, %v1259_v11  ;;  %v702_v42 = vpop.eup %701 }
  0x82   : > { %s470_s19 = scalar_lea.vmem %s1354_s9, %s1275_s14  ;;  %s465_s29 = scalar_lea.vmem %s1353_s8, %s1275_s14 }
  0x83   : > { %v471_v41 = vld [vmem:[%s470_s19] sm:$0x1]  ;;  %v463_v44 = vmul.f32 %v702_v42, %v461_v40 }
  0x84   : > { %v466_v43 = vld [vmem:[%s465_s29] sm:$0x1]  ;;  %v472_v45 = vadd.f32 %v702_v42, %v471_v41 }
  0x85   : > { %v467_v46 = vadd.f32 %v466_v43, %v463_v44 }
  0x86   : > { %473 = vst.msk [vmem:[%s470_s19] sm:$0x1] %vm468_vm1, %v472_v45 }
  0x87   : > { %469 = vst.msk [vmem:[%s465_s29] sm:$0x1] %vm468_vm1, %v467_v46 }
  0x88 PF: > { %p660_p1 = scmp.ge.s32.totalorder %s791_s20, 2  ;;  %s566_s27 = sand.u32 1, %s779_s1  }
  0x89   : > { %s567_s15 = scalar_lea.sflag [#allocation6], %s566_s27 }
  0x8a   : > { %p657_p0 = pnand %p660_p1, %p896_p2 }
  0x8c   : > { %774 = dma.done.wait (!%p657_p0), %s567_s15, 16  }
  0x8d   : > { %776 = vsyncadd (!%p657_p0), %s567_s15, 4294967280  ;;  %s1366_s20 = sld [smem:[#allocation10_spill]]  ;;  %s1367_s14 = sld [smem:[#allocation9_spill]] }
  0x8e   : > { %s1368_s19 = sld [smem:[#allocation11_spill]]  ;;  %s1369_s1 = smov %s783_s18 }
  0x93   : > { %p30_p3 = scmp.ge.s32.totalorder %s1366_s20, 66   ;;  %s1370_s18 = smov %s1367_s14 }
  0x95   :  { %32 = sbr.rel (!%p30_p3) target bundleno = 28 (0x1c), region = 106 }
  0x9c   :  { %571 = vsyncpa [#allocation6], 1 }
  0x9d   :  { %573 = vsyncpa [#allocation6 + $0x1], 1 }

</bundles_post_ra>
